<compile_context>
chip_gen: v7x
topology: tpu7x:2x2x1
jax: 0.10.0
libtpu: 0.0.40
codegen_flags: <defaults>
</compile_context>

<pallas_src>
import functools

import jax
import jax.numpy as jnp
from jax.experimental import pallas as pl
from jax.experimental.pallas import tpu as pltpu


# ----------------------------------------------------------------------------
# Pallas kernel: fused  relu(x) -> fc1+relu -> fc2+relu -> fc3+sigmoid
# One row tile of the flattened (bs*ncrops*t, f) matrix per grid step.
# ----------------------------------------------------------------------------
def _mlp_kernel(x_ref, w1_ref, b1_ref, w2_ref, b2_ref, w3_ref, b3_ref,
                feat_ref, score_ref):
    # features = relu(drop_out(Atten(out)))   (dropout = identity in eval)
    feat = jnp.maximum(x_ref[...], 0.0)
    feat_ref[...] = feat.astype(feat_ref.dtype)

    # scores = relu(fc1(features))  -- bf16 operands on the MXU, f32 accumulate
    h1 = jnp.dot(feat.astype(jnp.bfloat16), w1_ref[...],
                 preferred_element_type=jnp.float32)
    h1 = jnp.maximum(h1 + b1_ref[...], 0.0)

    # scores = relu(fc2(scores))
    h2 = jnp.dot(h1.astype(jnp.bfloat16), w2_ref[...],
                 preferred_element_type=jnp.float32)
    h2 = jnp.maximum(h2 + b2_ref[...], 0.0)

    # scores = sigmoid(fc3(scores)).  Output width is 1: a VPU multiply plus a
    # keepdims lane reduce keeps the result on sublanes (no XLU repack) and
    # rides the slack left by the MXU-bound fc1/fc2.  Score bytes are ~1/F of
    # the feat writeback, so the narrow (TILE, 1) store is negligible.
    s = jnp.sum(h2 * w3_ref[...], axis=-1, keepdims=True) + b3_ref[0, 0]
    score_ref[...] = jax.nn.sigmoid(s).astype(score_ref.dtype)


def _choose_tile_rows(n_rows, n_feat, feat_bytes):
    """Pick the largest 128-multiple row tile that (a) divides the 128-padded
    row count (so the jnp.pad fallback -- an extra HBM pass over (N,F) --
    almost never triggers) and (b) keeps the double-buffered x + feat tiles
    inside a conservative cross-generation VMEM budget (fits v7x's 64 MiB VMEM
    and leaves headroom on v5e).  For f=2048 this caps at 512 rows; for small
    f it grows up to 2048 rows to amortize the ~0.35 us per-grid-step cost."""
    budget = 24 * 1024 * 1024                       # 2 x-bufs + 2 feat-bufs
    per_row = 2 * n_feat * (4 + feat_bytes)
    cap = max(128, (budget // per_row) // 128 * 128)
    n128 = ((n_rows + 127) // 128) * 128
    for cand in (2048, 1024, 512, 256, 128):
        if cand <= cap and cand <= n128 and n128 % cand == 0:
            return cand
    return 128


def fused_score_mlp(x2d, w1, b1, w2, b2, w3, b3, *, feat_dtype=jnp.float32):
    """x2d: (N, F) float32. Returns (features (N, F), scores (N, 1))."""
    n, f = x2d.shape
    h1d, h2d = w1.shape[1], w2.shape[1]
    feat_bytes = jnp.dtype(feat_dtype).itemsize

    tile = _choose_tile_rows(n, f, feat_bytes)
    n_pad = ((n + tile - 1) // tile) * tile
    if n_pad != n:
        # TODO(synk): rare path (tile divides the 128-padded row count, so this
        # pads at most 127 rows); an in-kernel @pl.when row mask on the last
        # tile would remove even this extra pass.
        x2d = jnp.pad(x2d, ((0, n_pad - n), (0, 0)))
    num_tiles = n_pad // tile

    w1b = w1.astype(jnp.bfloat16)
    w2b = w2.astype(jnp.bfloat16)
    w3row = w3.reshape(1, h2d).astype(jnp.float32)   # fc3 weight as a lane row
    b1r = b1.reshape(1, h1d).astype(jnp.float32)
    b2r = b2.reshape(1, h2d).astype(jnp.float32)
    b3s = b3.reshape(1, 1).astype(jnp.float32)       # fc3 bias as SMEM scalar

    def const(shape):                                 # VMEM-resident constants
        return pl.BlockSpec(shape, lambda i: tuple(0 for _ in shape))

    # Roofline hints for XLA's scheduler around the custom call.
    weight_bytes = (w1b.size * 2 + w2b.size * 2
                    + (b1r.size + b2r.size + w3row.size + b3s.size) * 4)
    cost = pl.CostEstimate(
        flops=2 * n_pad * (f * h1d + h1d * h2d + h2d),
        transcendentals=n_pad,                        # sigmoid
        bytes_accessed=(n_pad * f * 4 + n_pad * f * feat_bytes
                        + n_pad * 4 + weight_bytes))

    # Explicit VMEM budget: double-buffered row tiles + resident weights.
    tile_bytes = tile * f * (4 + feat_bytes) + tile * 4
    need = 2 * (tile_bytes + weight_bytes)
    vmem_limit = int(min(64 * 1024 * 1024, max(3 * need, 32 * 1024 * 1024)))

    extra = {}
    if jnp.dtype(feat_dtype) == x2d.dtype:
        # relu is conceptually in-place: reuse the x buffer for feat (drops one
        # full (N,F) HBM allocation when the caller donates the input buffer).
        extra["input_output_aliases"] = {0: 0}

    feat, score = pl.pallas_call(
        _mlp_kernel,
        out_shape=(
            jax.ShapeDtypeStruct((n_pad, f), feat_dtype),
            jax.ShapeDtypeStruct((n_pad, 1), jnp.float32),
        ),
        grid_spec=pltpu.PrefetchScalarGridSpec(
            num_scalar_prefetch=0,
            grid=(num_tiles,),
            in_specs=[
                pl.BlockSpec((tile, f), lambda i: (i, 0)),          # x row tile
                const((f, h1d)),                                    # w1 (bf16)
                const((1, h1d)),                                    # b1
                const((h1d, h2d)),                                  # w2 (bf16)
                const((1, h2d)),                                    # b2
                const((1, h2d)),                                    # w3 row
                pl.BlockSpec(memory_space=pltpu.MemorySpace.SMEM),  # b3 scalar
            ],
            out_specs=[
                pl.BlockSpec((tile, f), lambda i: (i, 0)),          # relu feats
                pl.BlockSpec((tile, 1), lambda i: (i, 0)),          # scores
            ],
        ),
        compiler_params=pltpu.CompilerParams(
            dimension_semantics=("parallel",),       # shard row tiles (v7x 2TC)
            vmem_limit_bytes=vmem_limit),
        cost_estimate=cost,
        **extra,
    )(x2d, w1b, b1r, w2b, b2r, w3row, b3s)

    return feat[:n], score[:n]


# ----------------------------------------------------------------------------
# Placeholder helpers for functions not supplied with the module source.
# ----------------------------------------------------------------------------
def rtfm_attention(x):
    # TODO(synk): RTFM_Attention(len_feature=2048) definition was not provided;
    # using identity pass-through.
    return x


def calculating_dist(test_type, features, index_dist):
    # TODO(synk): calculating_dist was not provided; returning the features
    # unchanged (same shape/element count, so downstream views stay valid).
    del test_type, index_dist
    return features


def diff_seg(n_size, t, features2, k_near):
    # TODO(synk): diff_seg was not provided; using per-segment L2 magnitude as
    # the "difference" score and identity segment indices.
    del k_near
    diff = jnp.linalg.norm(features2, axis=2)                     # (n_size, t)
    idx = jnp.broadcast_to(jnp.arange(t, dtype=jnp.int32), (n_size, t))
    return diff, idx


def correct_index(n_size, idx, diff_index_q):
    # TODO(synk): correct_index was not provided; returning topk indices as-is.
    del n_size, diff_index_q
    return idx


# ----------------------------------------------------------------------------
# Parameter init (deterministic, matches weight_init: xavier_uniform + 0 bias)
# ----------------------------------------------------------------------------
def xavier_uniform(key, fan_in, fan_out):
    bound = jnp.sqrt(6.0 / (fan_in + fan_out))
    return jax.random.uniform(key, (fan_in, fan_out), jnp.float32,
                              minval=-bound, maxval=bound)


def init_params(key, n_features):
    k1, k2, k3 = jax.random.split(key, 3)
    return {
        "w1": xavier_uniform(k1, n_features, 512),
        "b1": jnp.zeros((1, 512), jnp.float32),
        "w2": xavier_uniform(k2, 512, 128),
        "b2": jnp.zeros((1, 128), jnp.float32),
        "w3": xavier_uniform(k3, 128, 1),
        "b3": jnp.zeros((1, 1), jnp.float32),
    }


# ----------------------------------------------------------------------------
# Full forward pass (Pallas hot path + JAX glue replicating the torch logic)
# ----------------------------------------------------------------------------
def model_forward(params, inputs, *, batch_size):
    num_segments = 32
    k_abn = num_segments // 10            # 3
    topk = 4

    bs, ncrops, t, f = inputs.shape
    out = inputs.reshape(-1, t, f)                         # (bs*ncrops, t, f)
    out = rtfm_attention(out)

    # --- Pallas fused MLP: features = relu(out); scores = sigmoid MLP -------
    x2d = out.reshape(-1, f)                               # (bs*ncrops*t, f)
    feat2d, score2d = fused_score_mlp(
        x2d, params["w1"], params["b1"], params["w2"], params["b2"],
        params["w3"], params["b3"])
    features = feat2d.reshape(bs * ncrops, t, f)
    scores = score2d.reshape(bs, ncrops, t).mean(axis=1)[:, :, None]  # (bs,t,1)

    normal_features = features[0:batch_size * 10]
    normal_scores = scores[0:batch_size]
    abnormal_features = features[batch_size * 10:]
    abnormal_scores = scores[batch_size:]
    if bs == 1:
        abnormal_features = normal_features
        abnormal_scores = normal_scores
        n_size = bs
    else:
        n_size = bs // 2

    abnormal_features2 = abnormal_features.reshape(n_size, ncrops, t, f).mean(1)
    normal_features2 = normal_features.reshape(n_size, ncrops, t, f).mean(1)
    del normal_features2  # computed in torch but unused afterwards

    abnormal_dist_features = calculating_dist("param", abnormal_features, 6)
    normal_dist_features = calculating_dist("param", normal_features, 5)
    topk_ab_values, _ = jax.lax.top_k(abnormal_dist_features, topk)
    topk_n_values, _ = jax.lax.top_k(normal_dist_features, topk)

    k_near = 3

    def select_branch(dist_features, branch_scores):
        # (torch code uses abnormal_features2 for BOTH branches; reproduce it)
        total_diff, diff_index = diff_seg(n_size, t, abnormal_features2, k_near)
        diff_drop = total_diff                              # dropout(ones)=id
        _, idx = jax.lax.top_k(diff_drop, k_abn)            # (n_size, k_abn)
        new_idx = correct_index(n_size, idx, diff_index)
        idx_feat = jnp.broadcast_to(new_idx[:, :, None], (n_size, k_abn, f))
        per_crop = dist_features.reshape(n_size, ncrops, t, f).transpose(1, 0, 2, 3)
        gathered = jnp.take_along_axis(per_crop, idx_feat[None], axis=2)
        select_feature = gathered.reshape(ncrops * n_size, k_abn, f)
        idx_score = jnp.broadcast_to(new_idx[:, :, None], (n_size, k_abn, 1))
        score_sel = jnp.take_along_axis(branch_scores, idx_score, axis=1)
        score = jnp.mean(score_sel, axis=1)                 # (n_size, 1)
        return score, select_feature

    score_abnormal, feat_abnormal = select_branch(abnormal_dist_features,
                                                  abnormal_scores)
    score_normal, feat_normal = select_branch(normal_dist_features,
                                              normal_scores)

    scores_out = jnp.concatenate((normal_scores, abnormal_scores), axis=0)
    return (score_abnormal, score_normal, topk_ab_values, topk_n_values,
            feat_abnormal, feat_normal, scores_out)


# ----------------------------------------------------------------------------
if __name__ == "__main__":
    # Small but structurally faithful shapes:
    #   ncrops = 10 (hard-coded in the torch slicing), t = 32 (num_segments),
    #   bs = 2 * batch_size (normal + abnormal halves), f = n_features.
    batch_size = 1
    bs, ncrops, t, n_features = 2, 10, 32, 256

    key = jax.random.PRNGKey(0)
    k_in, k_par = jax.random.split(key)
    inputs = jax.random.normal(k_in, (bs, ncrops, t, n_features), jnp.float32)
    params = init_params(k_par, n_features)

    # Donate `inputs` so the relu-in-place alias (input_output_aliases={0:0})
    # is honoured without a defensive copy.
    fwd = jax.jit(functools.partial(model_forward, batch_size=batch_size),
                  donate_argnums=(1,))
    outs = fwd(params, inputs)
    outs = jax.block_until_ready(outs)

    (score_abnormal, score_normal, feat_dist_abn, feat_dist_nor,
     feat_abn, feat_nor, scores) = outs
    assert score_abnormal.shape == (1, 1)
    assert score_normal.shape == (1, 1)
    assert feat_dist_abn.shape == (ncrops, t, 4)
    assert feat_dist_nor.shape == (ncrops, t, 4)
    assert feat_abn.shape == (ncrops, 3, n_features)
    assert feat_nor.shape == (ncrops, 3, n_features)
    assert scores.shape == (bs, t, 1)
    print("KERNEL_OK")
</pallas_src>

<mosaic_0001>
module attributes {stable_mosaic.version = 11 : i64} {
  func.func @_mlp_kernel(%arg0: i32, %arg1: memref<128x256xf32, #tpu.memory_space<vmem>>, %arg2: memref<256x512xbf16, #tpu.memory_space<vmem>>, %arg3: memref<1x512xf32, #tpu.memory_space<vmem>>, %arg4: memref<512x128xbf16, #tpu.memory_space<vmem>>, %arg5: memref<1x128xf32, #tpu.memory_space<vmem>>, %arg6: memref<1x128xf32, #tpu.memory_space<vmem>>, %arg7: memref<1x1xf32, #tpu.memory_space<smem>>, %arg8: memref<128x256xf32, #tpu.memory_space<vmem>>, %arg9: memref<128x1xf32, #tpu.memory_space<vmem>>) attributes {dimension_semantics = [#tpu.dimension_semantics<parallel>], iteration_bounds = array<i64: 5>, scalar_prefetch = 0 : i64, scratch_operands = 0 : i64, tpu.core_type = #tpu.core_type<tc>, window_params = [{transform_indices = @transform_0, window_bounds = array<i64: 128, 256>}, {pipeline_mode = #tpu.pipeline_mode<synchronous>, transform_indices = @transform_1, window_bounds = array<i64: 256, 512>}, {pipeline_mode = #tpu.pipeline_mode<synchronous>, transform_indices = @transform_2, window_bounds = array<i64: 1, 512>}, {pipeline_mode = #tpu.pipeline_mode<synchronous>, transform_indices = @transform_3, window_bounds = array<i64: 512, 128>}, {pipeline_mode = #tpu.pipeline_mode<synchronous>, transform_indices = @transform_4, window_bounds = array<i64: 1, 128>}, {pipeline_mode = #tpu.pipeline_mode<synchronous>, transform_indices = @transform_5, window_bounds = array<i64: 1, 128>}, {transform_indices = @transform_6, window_bounds = array<i64: 1, 1>}, {transform_indices = @transform_7, window_bounds = array<i64: 128, 256>}, {transform_indices = @transform_8, window_bounds = array<i64: 128, 1>}]} {
    %c0 = arith.constant 0 : index
    %c0_0 = arith.constant 0 : index
    %0 = vector.load %arg1[%c0, %c0_0] : memref<128x256xf32, #tpu.memory_space<vmem>>, vector<128x256xf32>
    %cst = arith.constant 0.000000e+00 : f32
    %1 = vector.broadcast %cst : f32 to vector<128x256xf32>
    %2 = arith.maximumf %0, %1 : vector<128x256xf32>
    %c0_1 = arith.constant 0 : index
    %c0_2 = arith.constant 0 : index
    %3 = vector.load %arg8[%c0_1, %c0_2] : memref<128x256xf32, #tpu.memory_space<vmem>>, vector<128x256xf32>
    tpu.vector_store %arg8[%c0_1, %c0_2], %2 {strides = array<i32>} : memref<128x256xf32, #tpu.memory_space<vmem>>, vector<128x256xf32>,
    %4 = arith.truncf %2 : vector<128x256xf32> to vector<128x256xbf16>
    %c0_3 = arith.constant 0 : index
    %c0_4 = arith.constant 0 : index
    %5 = vector.load %arg2[%c0_3, %c0_4] : memref<256x512xbf16, #tpu.memory_space<vmem>>, vector<256x512xbf16>
    %cst_5 = arith.constant dense<0.000000e+00> : vector<128x512xf32>
    %6 = tpu.matmul %4, %5, %cst_5 {dimension_numbers = #tpu.dot_dimension_numbers<[1], [0], [0], [1], [0, 0, 1, 1], [], []>} : vector<128x256xbf16>, vector<256x512xbf16>, vector<128x512xf32> -> vector<128x512xf32>
    %c0_6 = arith.constant 0 : index
    %c0_7 = arith.constant 0 : index
    %7 = vector.load %arg3[%c0_6, %c0_7] : memref<1x512xf32, #tpu.memory_space<vmem>>, vector<1x512xf32>
    %8 = vector.broadcast %7 : vector<1x512xf32> to vector<128x512xf32>
    %9 = arith.addf %6, %8 : vector<128x512xf32>
    %cst_8 = arith.constant 0.000000e+00 : f32
    %10 = vector.broadcast %cst_8 : f32 to vector<128x512xf32>
    %11 = arith.maximumf %9, %10 : vector<128x512xf32>
    %12 = arith.truncf %11 : vector<128x512xf32> to vector<128x512xbf16>
    %c0_9 = arith.constant 0 : index
    %c0_10 = arith.constant 0 : index
    %13 = vector.load %arg4[%c0_9, %c0_10] : memref<512x128xbf16, #tpu.memory_space<vmem>>, vector<512x128xbf16>
    %cst_11 = arith.constant dense<0.000000e+00> : vector<128x128xf32>
    %14 = tpu.matmul %12, %13, %cst_11 {dimension_numbers = #tpu.dot_dimension_numbers<[1], [0], [0], [1], [0, 0, 1, 1], [], []>} : vector<128x512xbf16>, vector<512x128xbf16>, vector<128x128xf32> -> vector<128x128xf32>
    %c0_12 = arith.constant 0 : index
    %c0_13 = arith.constant 0 : index
    %15 = vector.load %arg5[%c0_12, %c0_13] : memref<1x128xf32, #tpu.memory_space<vmem>>, vector<1x128xf32>
    %16 = vector.broadcast %15 : vector<1x128xf32> to vector<128x128xf32>
    %17 = arith.addf %14, %16 : vector<128x128xf32>
    %cst_14 = arith.constant 0.000000e+00 : f32
    %18 = vector.broadcast %cst_14 : f32 to vector<128x128xf32>
    %19 = arith.maximumf %17, %18 : vector<128x128xf32>
    %c0_15 = arith.constant 0 : index
    %c0_16 = arith.constant 0 : index
    %20 = vector.load %arg6[%c0_15, %c0_16] : memref<1x128xf32, #tpu.memory_space<vmem>>, vector<1x128xf32>
    %21 = vector.broadcast %20 : vector<1x128xf32> to vector<128x128xf32>
    %22 = arith.mulf %19, %21 : vector<128x128xf32>
    %cst_17 = arith.constant dense<0.000000e+00> : vector<128xf32>
    %23 = vector.multi_reduction <add>, %22, %cst_17 [1] : vector<128x128xf32> to vector<128xf32>
    %24 = vector.shape_cast %23 : vector<128xf32> to vector<128x1xf32>
    %c0_18 = arith.constant 0 : index
    %c0_19 = arith.constant 0 : index
    %25 = memref.load %arg7[%c0_18, %c0_19] : memref<1x1xf32, #tpu.memory_space<smem>>
    %26 = vector.broadcast %25 : f32 to vector<128x1xf32>
    %27 = arith.addf %24, %26 : vector<128x1xf32>
    %28 = arith.negf %27 : vector<128x1xf32>
    %29 = math.exp %28 : vector<128x1xf32>
    %cst_20 = arith.constant 1.000000e+00 : f32
    %30 = vector.broadcast %cst_20 : f32 to vector<128x1xf32>
    %31 = arith.addf %30, %29 : vector<128x1xf32>
    %32 = arith.divf %30, %31 : vector<128x1xf32>
    %c0_21 = arith.constant 0 : index
    %c0_22 = arith.constant 0 : index
    %33 = vector.load %arg9[%c0_21, %c0_22] : memref<128x1xf32, #tpu.memory_space<vmem>>, vector<128x1xf32>
    tpu.vector_store %arg9[%c0_21, %c0_22], %32 {strides = array<i32>} : memref<128x1xf32, #tpu.memory_space<vmem>>, vector<128x1xf32>,
    return
  }
  func.func @transform_0(%arg0: i32) -> (i32, i32) {
    %c0_i32 = arith.constant 0 : i32
    %c0_i32_0 = arith.constant 0 : i32
    return %arg0, %c0_i32 : i32, i32
  }
  func.func @transform_1(%arg0: i32) -> (i32, i32) {
    %c0_i32 = arith.constant 0 : i32
    %c0_i32_0 = arith.constant 0 : i32
    %c0_i32_1 = arith.constant 0 : i32
    return %c0_i32, %c0_i32_0 : i32, i32
  }
  func.func @transform_2(%arg0: i32) -> (i32, i32) {
    %c0_i32 = arith.constant 0 : i32
    %c0_i32_0 = arith.constant 0 : i32
    %c0_i32_1 = arith.constant 0 : i32
    return %c0_i32, %c0_i32_0 : i32, i32
  }
  func.func @transform_3(%arg0: i32) -> (i32, i32) {
    %c0_i32 = arith.constant 0 : i32
    %c0_i32_0 = arith.constant 0 : i32
    %c0_i32_1 = arith.constant 0 : i32
    return %c0_i32, %c0_i32_0 : i32, i32
  }
  func.func @transform_4(%arg0: i32) -> (i32, i32) {
    %c0_i32 = arith.constant 0 : i32
    %c0_i32_0 = arith.constant 0 : i32
    %c0_i32_1 = arith.constant 0 : i32
    return %c0_i32, %c0_i32_0 : i32, i32
  }
  func.func @transform_5(%arg0: i32) -> (i32, i32) {
    %c0_i32 = arith.constant 0 : i32
    %c0_i32_0 = arith.constant 0 : i32
    %c0_i32_1 = arith.constant 0 : i32
    return %c0_i32, %c0_i32_0 : i32, i32
  }
  func.func @transform_6(%arg0: i32) -> (i32, i32) {
    %c0_i32 = arith.constant 0 : i32
    %c0_i32_0 = arith.constant 0 : i32
    %c0_i32_1 = arith.constant 0 : i32
    return %c0_i32, %c0_i32_0 : i32, i32
  }
  func.func @transform_7(%arg0: i32) -> (i32, i32) {
    %c0_i32 = arith.constant 0 : i32
    %c0_i32_0 = arith.constant 0 : i32
    return %arg0, %c0_i32 : i32, i32
  }
  func.func @transform_8(%arg0: i32) -> (i32, i32) {
    %c0_i32 = arith.constant 0 : i32
    %c0_i32_0 = arith.constant 0 : i32
    return %arg0, %c0_i32 : i32, i32
  }
}

</mosaic_0001>

<bundles_post_ra>
// kernel: model_forward.1
= control target key start
LH: loop header
LB: loop body
LE: loop exit
PB: predicated region body
PF: predicated region fallthrough
CT: control target
= control target key end

     0   :  { %s3506_s0 = inlined_call_operand.vmem [shape: f32[640,256], index: 0, kind: input, shape index: {}, may-alias: {0,7}]   ;;  %s3507_s1 = inlined_call_operand.vmem [shape: bf16[256,512], index: 1, kind: input, shape index: {}]   ;;  %s3508_s2 = inlined_call_operand.hbm [shape: f32[1,512], index: 2, kind: input, shape index: {}]   ;;  %s3509_s3 = inlined_call_operand.vmem [shape: bf16[512,128], index: 3, kind: input, shape index: {}]   ;;  %s3510_s4 = inlined_call_operand.hbm [shape: f32[1,128], index: 4, kind: input, shape index: {}]   ;;  %s3511_s5 = inlined_call_operand.hbm [shape: f32[1,128], index: 5, kind: input, shape index: {}]   ;;  %s3512_s6 = inlined_call_operand.<no memory space> [shape: f32[1,1], index: 6, kind: input, shape index: {}]   ;;  %s3513_s7 = inlined_call_operand.vmem [shape: f32[640,256], index: 7, kind: output, shape index: {0}, may-alias: {0,7}]   ;;  %s3514_s8 = inlined_call_operand.vmem [shape: f32[640,1], index: 8, kind: output, shape index: {1}]  }
   0x1   :  { %14 = sst [smem:[#allocation2]] %s3512_s6 }
   0x2   :  { %15 = vsyncpa [#allocation4], 0 }
   0x3   :  { %16 = vsyncpa [#allocation6], 0  ;;  %s2637_s29 = smov 0  }
   0x4 LB: > { %s1990_s30 = sadd.s32 4294967295, %s2584_s29   ;;  %p1992_p0 = scmp.ge.s32.totalorder %s2584_s29, 1  ;;  %s2584_s29 = sphi %s2637_s29, %s22_s29  }
   0x5   : > { %p231_p1 = scmp.lt.s32.totalorder %s2584_s29, 6  ;;  %p2647_p2 = scmp.eq.s32.totalorder %s1990_s30, 0 }
   0x6   : > { %s2586_s10 = smov [#allocation5]   ;;  %s2587_s12 = smov [#allocation3]  }
   0x7   : > { %s3519_s9 = scalar_select %p2647_p2, 1, 0 }
   0x8   : > { %p2651_p3 = pnand %p1992_p0, %p231_p1  ;;  %s261_s11 = sshll.u32 %s2586_s10, 4  ;;  %s262_s11 = int_to_ptr.vmem [resolvable:$true] %s261_s11 }
   0x9   : > { %s247_s13 = sshll.u32 %s2587_s12, 4  ;;  %s2588_s14 = smov [#allocation7]   ;;  %s2663_s13 = int_to_ptr.vmem [resolvable:$true] %s247_s13 }
   0xa   : > { %s3520_s6 = scalar_select %p2651_p3, 1, 0 }
   0xb   : > { %p2267_p4 = pneg %p2651_p3  ;;  %s272_s15 = sshll.u32 %s2588_s14, 4  ;;  %s2665_s15 = int_to_ptr.vmem [resolvable:$true] %s272_s15 }
   0xc   : > { %s2486_s19 = scalar_lea.hbm %s3510_s4, 16 }
   0xd   : > { %p2659_p5 = pnand %p2647_p2, %p2267_p4  ;;  %p2487_p6 = scmp.ne.s32.totalorder %s3510_s4, %s2486_s19 }
   0xe   : > { %p2493_p10 = scmp.lt.u32.totalorder %s2486_s19, %s3510_s4 }
   0xf   : > { %p2675_p7 = pneg %p2659_p5 }
  0x11   : > { %p2489_p8 = pnand %p2675_p7, %p2487_p6 }
  0x13   : > { %p2490_p9 = pneg %p2489_p8 }
  0x15   : > { %p2495_p11 = pnand %p2493_p10, %p2490_p9 }
  0x17   : > { %2498 = shalt.err (!%p2495_p11)
}
  0x18   : > { %s2499_s25 = scalar_lea.vmem %s262_s11, 16  ;;  %s2506_s26 = scalar_lea.vmem %s262_s11, 32 }
  0x19   : > { %p2500_p12 = scmp.ne.s32.totalorder %s262_s11, %s2499_s25  ;;  %p2507_p1 = scmp.lt.s32.totalorder %s262_s11, %s262_s11 }
  0x1a   : > { %p2508_p4 = scmp.lt.s32.totalorder %s2506_s26, %s2499_s25 }
  0x1b   : > { %p2502_p13 = pnand %p2500_p12, %p2675_p7 }
  0x1c   : > { %p2509_p2 = por %p2508_p4, %p2507_p1 }
  0x1d   : > { %p2503_p0 = pneg %p2502_p13 }
  0x1f   : > { %p2510_p3 = pnand %p2509_p2, %p2503_p0 }
  0x21   : > { %2513 = shalt.err (!%p2510_p3)
}
  0x22   : > { %2273 = dma.hbm_to_vmem [thread:$0]  (!%p2659_p5), %s3510_s4, 16, %s262_s11, [#allocation6]  }
  0x23   : > { %s2514_s14 = scalar_lea.hbm %s3508_s2, 64 }
  0x24   : > { %p2515_p6 = scmp.ne.s32.totalorder %s3508_s2, %s2514_s14  ;;  %p2521_p2 = scmp.lt.u32.totalorder %s2514_s14, %s3508_s2 }
  0x26   : > { %p2517_p8 = pnand %p2515_p6, %p2675_p7 }
  0x28   : > { %p2518_p9 = pneg %p2517_p8 }
  0x2a   : > { %p2523_p3 = pnand %p2521_p2, %p2518_p9 }
  0x2c   : > { %2526 = shalt.err (!%p2523_p3)
}
  0x2d   : > { %s2527_s11 = scalar_lea.vmem %s2663_s13, 64  ;;  %p2535_p13 = scmp.lt.s32.totalorder %s2663_s13, %s2663_s13 }
  0x2e   : > { %p2528_p10 = scmp.ne.s32.totalorder %s2663_s13, %s2527_s11  ;;  %p2536_p0 = scmp.lt.s32.totalorder %s2527_s11, %s2527_s11 }
  0x30   : > { %p2530_p11 = pnand %p2528_p10, %p2675_p7  ;;  %p2537_p1 = por %p2536_p0, %p2535_p13 }
  0x32   : > { %p2531_p12 = pneg %p2530_p11 }
  0x34   : > { %p2538_p4 = pnand %p2537_p1, %p2531_p12 }
  0x36   : > { %2541 = shalt.err (!%p2538_p4)
}
  0x37   : > { %2270 = dma.hbm_to_vmem [thread:$0]  (!%p2659_p5), %s3508_s2, 64, %s2663_s13, [#allocation4]  }
  0x38   : > { %s2542_s26 = scalar_lea.hbm %s3511_s5, 16 }
  0x39   : > { %p2543_p6 = scmp.ne.s32.totalorder %s3511_s5, %s2542_s26  ;;  %p2549_p2 = scmp.lt.u32.totalorder %s2542_s26, %s3511_s5 }
  0x3b   : > { %p2545_p8 = pnand %p2543_p6, %p2675_p7 }
  0x3d   : > { %p2546_p9 = pneg %p2545_p8 }
  0x3f   : > { %p2551_p3 = pnand %p2549_p2, %p2546_p9 }
  0x41   : > { %2554 = shalt.err (!%p2551_p3)
}
  0x42   : > { %s2555_s13 = scalar_lea.vmem %s2665_s15, 16  ;;  %s2562_s14 = scalar_lea.vmem %s2665_s15, 32 }
  0x43   : > { %p2556_p10 = scmp.ne.s32.totalorder %s2665_s15, %s2555_s13  ;;  %p2563_p13 = scmp.lt.s32.totalorder %s2665_s15, %s2665_s15 }
  0x44   : > { %p2564_p0 = scmp.lt.s32.totalorder %s2562_s14, %s2555_s13 }
  0x45   : > { %p2558_p11 = pnand %p2556_p10, %p2675_p7 }
  0x46   : > { %p2565_p1 = por %p2564_p0, %p2563_p13 }
  0x47   : > { %p2559_p12 = pneg %p2558_p11 }
  0x49   : > { %p2566_p4 = pnand %p2565_p1, %p2559_p12 }
  0x4b   : > { %2569 = shalt.err (!%p2566_p4)
}
  0x4c   : > { %2276 = dma.hbm_to_vmem [thread:$0]  (!%p2659_p5), %s3511_s5, 16, %s2665_s15, [#allocation6]  }
  0x4d   : > { %p3523_p6 = scmp.ne.s32.totalorder %s3520_s6, 0 }
  0x4e   : > { %p3524_p7 = scmp.ne.s32.totalorder (!%p3523_p6), %s3519_s9, 0 }
  0x4f   : > { %298 = sbr.rel (%p3523_p6) target bundleno = 828 (0x33c), region = 48 }
  0x56   : > { %2575 = dma.done.wait (%p3524_p7), [#allocation4], 64  }
  0x57   : > { %2577 = vsyncadd (%p3524_p7), [#allocation4], 4294967232 }
  0x58   : > { %2579 = dma.done.wait (%p3524_p7), [#allocation6], 32  }
  0x59   : > { %2581 = vsyncadd (%p3524_p7), [#allocation6], 4294967264  ;;  %v2294_v0 = vld [vmem:[%s3507_s1 + $0x4] ss:$16 sps:$4 sm:$0xff]   ;;  %v2296_v1 = vld [vmem:[%s3507_s1 + $0xc] ss:$16 sps:$4 sm:$0xff]  }
  0x5a   : > { %886 = vmatprep.subr.bf16.mxu0 %v2294_v0  ;;  %v2298_v2 = vld [vmem:[%s3507_s1] ss:$16 sps:$4 sm:$0xff]   ;;  %v2299_v3 = vld [vmem:[%s3507_s1 + $0x8] ss:$16 sps:$4 sm:$0xff]   ;;  %999 = vmatprep.subr.bf16.mxu1 %v2296_v1  ;;  %v2300_v4 = vld [vmem:[%s3507_s1 + $0x24] ss:$16 sps:$4 sm:$0xff]  }
  0x5b   : > { %887 = vmatpush1.bf16.msra.mxu0 %v2298_v2  ;;  %1000 = vmatpush1.bf16.msra.mxu1 %v2299_v3  ;;  %v2302_v5 = vld [vmem:[%s3507_s1 + $0x2c] ss:$16 sps:$4 sm:$0xff]   ;;  %v2304_v6 = vld [vmem:[%s3507_s1 + $0x20] ss:$16 sps:$4 sm:$0xff]   ;;  %v2305_v7 = vld [vmem:[%s3507_s1 + $0x28] ss:$16 sps:$4 sm:$0xff]  }
  0x5c   : > { %888 = vmatprep.subr.bf16.mxu0 %v2300_v4  ;;  %1001 = vmatprep.subr.bf16.mxu1 %v2302_v5  ;;  %v2306_v8 = vld [vmem:[%s3507_s1 + $0x44] ss:$16 sps:$4 sm:$0xff]   ;;  %v2308_v9 = vld [vmem:[%s3507_s1 + $0x4c] ss:$16 sps:$4 sm:$0xff]   ;;  %v2310_v10 = vld [vmem:[%s3507_s1 + $0x40] ss:$16 sps:$4 sm:$0xff]  }
  0x5d   : > { %v2311_v11 = vld [vmem:[%s3507_s1 + $0x48] ss:$16 sps:$4 sm:$0xff]   ;;  %v2312_v12 = vld [vmem:[%s3507_s1 + $0x64] ss:$16 sps:$4 sm:$0xff]   ;;  %v2314_v13 = vld [vmem:[%s3507_s1 + $0x6c] ss:$16 sps:$4 sm:$0xff]  }
  0x5e   : > { %v2316_v14 = vld [vmem:[%s3507_s1 + $0x60] ss:$16 sps:$4 sm:$0xff]   ;;  %v2317_v15 = vld [vmem:[%s3507_s1 + $0x68] ss:$16 sps:$4 sm:$0xff]   ;;  %v2318_v16 = vld [vmem:[%s3507_s1 + $0x84] ss:$16 sps:$4 sm:$0xff]  }
  0x5f   : > { %889 = vmatpush1.bf16.msra.mxu0 %v2304_v6  ;;  %1002 = vmatpush1.bf16.msra.mxu1 %v2305_v7  ;;  %v2320_v17 = vld [vmem:[%s3507_s1 + $0x8c] ss:$16 sps:$4 sm:$0xff]   ;;  %v2322_v18 = vld [vmem:[%s3507_s1 + $0x80] ss:$16 sps:$4 sm:$0xff]   ;;  %v2323_v19 = vld [vmem:[%s3507_s1 + $0x88] ss:$16 sps:$4 sm:$0xff]  }
  0x60   : > { %890 = vmatprep.subr.bf16.mxu0 %v2306_v8  ;;  %1003 = vmatprep.subr.bf16.mxu1 %v2308_v9  ;;  %v2324_v20 = vld [vmem:[%s3507_s1 + $0xa4] ss:$16 sps:$4 sm:$0xff]   ;;  %v2326_v21 = vld [vmem:[%s3507_s1 + $0xac] ss:$16 sps:$4 sm:$0xff]   ;;  %v2328_v22 = vld [vmem:[%s3507_s1 + $0xa0] ss:$16 sps:$4 sm:$0xff]  }
  0x61   : > { %v2329_v23 = vld [vmem:[%s3507_s1 + $0xa8] ss:$16 sps:$4 sm:$0xff]   ;;  %v2330_v24 = vld [vmem:[%s3507_s1 + $0xc4] ss:$16 sps:$4 sm:$0xff]   ;;  %v2332_v25 = vld [vmem:[%s3507_s1 + $0xcc] ss:$16 sps:$4 sm:$0xff]  }
  0x62   : > { %v2334_v26 = vld [vmem:[%s3507_s1 + $0xc0] ss:$16 sps:$4 sm:$0xff]   ;;  %v2335_v27 = vld [vmem:[%s3507_s1 + $0xc8] ss:$16 sps:$4 sm:$0xff]   ;;  %v2336_v28 = vld [vmem:[%s3507_s1 + $0xe4] ss:$16 sps:$4 sm:$0xff]  }
  0x63   : > { %891 = vmatpush1.bf16.msra.mxu0 %v2310_v10  ;;  %1004 = vmatpush1.bf16.msra.mxu1 %v2311_v11  ;;  %v2338_v29 = vld [vmem:[%s3507_s1 + $0xec] ss:$16 sps:$4 sm:$0xff]   ;;  %s2001_s14 = sshll.u32 %s1990_s30, 4  ;;  %v2340_v30 = vld [vmem:[%s3507_s1 + $0xe0] ss:$16 sps:$4 sm:$0xff]   ;;  %s1736_s26 = sld [smem:[#allocation2]] }
  0x64   : > { %892 = vmatprep.subr.bf16.mxu0 %v2312_v12  ;;  %1005 = vmatprep.subr.bf16.mxu1 %v2314_v13  ;;  %v2341_v31 = vld [vmem:[%s3507_s1 + $0xe8] ss:$16 sps:$4 sm:$0xff]   ;;  %v2342_v32 = vld [vmem:[%s3507_s1 + $0x104] ss:$16 sps:$4 sm:$0xff]   ;;  %p348_p5 = scmp.lt.s32.totalorder %s2001_s14, 79  ;;  %vm1850_vm0 = vcmask 7168  }
  0x65   : > { %v2344_v33 = vld [vmem:[%s3507_s1 + $0x10c] ss:$16 sps:$4 sm:$0xff]   ;;  %v2346_v34 = vld [vmem:[%s3507_s1 + $0x100] ss:$16 sps:$4 sm:$0xff]   ;;  %v2347_v35 = vld [vmem:[%s3507_s1 + $0x108] ss:$16 sps:$4 sm:$0xff]  }
  0x66   : > { %v2348_v36 = vld [vmem:[%s3507_s1 + $0x124] ss:$16 sps:$4 sm:$0xff]   ;;  %s3537_s14 = smov (!%p348_p5, %s2001_s14), 79  ;;  %v2350_v37 = vld [vmem:[%s3507_s1 + $0x12c] ss:$16 sps:$4 sm:$0xff]  }
  0x67   : > { %893 = vmatpush1.bf16.msra.mxu0 %v2316_v14  ;;  %1006 = vmatpush1.bf16.msra.mxu1 %v2317_v15  ;;  %v2352_v38 = vld [vmem:[%s3507_s1 + $0x120] ss:$16 sps:$4 sm:$0xff]   ;;  %v2353_v39 = vld [vmem:[%s3507_s1 + $0x128] ss:$16 sps:$4 sm:$0xff]   ;;  %v2354_v40 = vld [vmem:[%s3507_s1 + $0x144] ss:$16 sps:$4 sm:$0xff]  }
  0x68   : > { %894 = vmatprep.subr.bf16.mxu0 %v2318_v16  ;;  %1007 = vmatprep.subr.bf16.mxu1 %v2320_v17  ;;  %s2125_s18 = sshll.u32 %s3537_s14, 4  ;;  %v2356_v41 = vld [vmem:[%s3507_s1 + $0x14c] ss:$16 sps:$4 sm:$0xff]   ;;  %v2358_v42 = vld [vmem:[%s3507_s1 + $0x140] ss:$16 sps:$4 sm:$0xff]   ;;  %s2008_s27 = sshll.u32 %s3537_s14, 3 }
  0x69   : > { %v2359_v43 = vld [vmem:[%s3507_s1 + $0x148] ss:$16 sps:$4 sm:$0xff]   ;;  %s2890_s21 = scalar_lea.vmem %s3506_s0, %s2125_s18  ;;  %v2360_v44 = vld [vmem:[%s3507_s1 + $0x164] ss:$16 sps:$4 sm:$0xff]   ;;  %v2362_v45 = vld [vmem:[%s3507_s1 + $0x16c] ss:$16 sps:$4 sm:$0xff]   ;;  %s3041_s16 = scalar_lea.vmem %s3513_s7, %s2125_s18 }
  0x6a   : > { %v2364_v46 = vld [vmem:[%s3507_s1 + $0x160] ss:$16 sps:$4 sm:$0xff]   ;;  %v2365_v47 = vld [vmem:[%s3507_s1 + $0x168] ss:$16 sps:$4 sm:$0xff]   ;;  %v2366_v49 = vld [vmem:[%s3507_s1 + $0x184] ss:$16 sps:$4 sm:$0xff]   ;;  %s3460_s12 = scalar_lea.vmem %s3514_s8, %s2008_s27 }
  0x6b   : > { %895 = vmatpush1.bf16.msra.mxu0 %v2322_v18  ;;  %1008 = vmatpush1.bf16.msra.mxu1 %v2323_v19  ;;  %v2905_v48 = vld [vmem:[%s2890_s21 + $0x8] sm:$0xff]  ;;  %v2914_v51 = vld [vmem:[%s2890_s21 + $0x18] sm:$0xff]  ;;  %v2918_v53 = vld [vmem:[%s2890_s21] sm:$0xff] }
  0x6c   : > { %896 = vmatprep.subr.bf16.mxu0 %v2324_v20  ;;  %1009 = vmatprep.subr.bf16.mxu1 %v2326_v21  ;;  %v2368_v50 = vld [vmem:[%s3507_s1 + $0x18c] ss:$16 sps:$4 sm:$0xff]   ;;  %v401_v52 = vmax.f32 %v2905_v48, 0.0  ;;  %v2921_v54 = vld [vmem:[%s2890_s21 + $0x10] sm:$0xff]  ;;  %v403_v55 = vmax.f32 %v2914_v51, 0.0  ;;  %v2931_v58 = vld [vmem:[%s2890_s21 + $0x20] sm:$0xff] }
  0x6d   : > { %v2925_v56 = vld [vmem:[%s2890_s21 + $0x28] sm:$0xff]  ;;  %v2928_v57 = vld [vmem:[%s2890_s21 + $0x38] sm:$0xff]  ;;  %v400_v59 = vmax.f32 %v2918_v53, 0.0  ;;  %v402_v60 = vmax.f32 %v2921_v54, 0.0  ;;  %v2936_v61 = vld [vmem:[%s2890_s21 + $0x30] sm:$0xff]  ;;  %v404_v5 = vmax.f32 %v2931_v58, 0.0 }
  0x6e   : > { %v2939_v62 = vld [vmem:[%s2890_s21 + $0x48] sm:$0xff]  ;;  %v2942_v63 = vld [vmem:[%s2890_s21 + $0x58] sm:$0xff]  ;;  %v2370_v0 = vld [vmem:[%s3507_s1 + $0x180] ss:$16 sps:$4 sm:$0xff]   ;;  %v465_v2 = vpack.c.bf16 %v403_v55, %v401_v52  ;;  %v405_v3 = vmax.f32 %v2925_v56, 0.0  ;;  %v407_v4 = vmax.f32 %v2928_v57, 0.0 }
  0x6f   : > { %897 = vmatpush1.bf16.msra.mxu0 %v2328_v22  ;;  %1010 = vmatpush1.bf16.msra.mxu1 %v2329_v23  ;;  %v2371_v1 = vld [vmem:[%s3507_s1 + $0x188] ss:$16 sps:$4 sm:$0xff]   ;;  %v2958_v6 = vld [vmem:[%s2890_s21 + $0x40] sm:$0xff]  ;;  %v2961_v7 = vld [vmem:[%s2890_s21 + $0x50] sm:$0xff]  ;;  %v406_v11 = vmax.f32 %v2936_v61, 0.0  ;;  %v409_v12 = vmax.f32 %v2939_v62, 0.0 }
  0x70   : > { %898 = vmatprep.subr.bf16.mxu0 %v2330_v24  ;;  %1011 = vmatprep.subr.bf16.mxu1 %v2332_v25  ;;  %v2964_v8 = vld [vmem:[%s2890_s21 + $0x68] sm:$0xff]  ;;  %v2372_v9 = vld [vmem:[%s3507_s1 + $0x1a4] ss:$16 sps:$4 sm:$0xff]   ;;  %v411_v13 = vmax.f32 %v2942_v63, 0.0  ;;  %v2976_v14 = vld [vmem:[%s2890_s21 + $0x78] sm:$0xff]  ;;  %v408_v17 = vmax.f32 %v2958_v6, 0.0 }
  0x71   : > { %v2374_v10 = vld [vmem:[%s3507_s1 + $0x1ac] ss:$16 sps:$4 sm:$0xff]   ;;  %v2979_v15 = vld [vmem:[%s2890_s21 + $0x60] sm:$0xff]  ;;  %v2982_v16 = vld [vmem:[%s2890_s21 + $0x70] sm:$0xff]  ;;  %v410_v18 = vmax.f32 %v2961_v7, 0.0  ;;  %v413_v19 = vmax.f32 %v2964_v8, 0.0  ;;  %918 = vmatprep.mubr.bf16.mxu0 %v465_v2  ;;  %1031 = vmatprep.mubr.bf16.mxu1 %v465_v2 }
  0x72   : > { %v2988_v20 = vld [vmem:[%s2890_s21 + $0x88] sm:$0xff]  ;;  %v2991_v21 = vld [vmem:[%s2890_s21 + $0x98] sm:$0xff]  ;;  %v2994_v22 = vld [vmem:[%s2890_s21 + $0x80] sm:$0xff]  ;;  %v415_v23 = vmax.f32 %v2976_v14, 0.0  ;;  %v412_v24 = vmax.f32 %v2979_v15, 0.0  ;;  %v414_v25 = vmax.f32 %v2982_v16, 0.0 }
  0x73   : > { %899 = vmatpush1.bf16.msra.mxu0 %v2334_v26  ;;  %1012 = vmatpush1.bf16.msra.mxu1 %v2335_v27  ;;  %v3000_v26 = vld [vmem:[%s2890_s21 + $0x90] sm:$0xff]  ;;  %v3003_v27 = vld [vmem:[%s2890_s21 + $0xa8] sm:$0xff]  ;;  %v396_v2 = vld [vmem:[%s2890_s21 + $0xe0] sm:$0xff] }
  0x74   : > { %900 = vmatprep.subr.bf16.mxu0 %v2336_v28  ;;  %1013 = vmatprep.subr.bf16.mxu1 %v2338_v29  ;;  %v3006_v28 = vld [vmem:[%s2890_s21 + $0xb8] sm:$0xff]  ;;  %v3011_v29 = vld [vmem:[%s3507_s1 + $0x1a0] ss:$16 sps:$4 sm:$0xff]   ;;  %v2394_v53 = vld [vmem:[%s3509_s3 + $0x48] sm:$0xff]  }
  0x75   : > { %v3526_v51 = vmax.f32 %v3006_v28, 0.0  ;;  %v2396_v54 = vld [vmem:[%s3509_s3 + $0xc8] sm:$0xff]   ;;  %v2402_v58 = vld [vmem:[%s3509_s3 + $0x58] sm:$0xff]   ;;  %v3530_v16 = vmax.f32 %v3006_v28, 0.0 }
  0x76   : > { %v2395_v56 = vld [vmem:[%s3509_s3 + $0x8] sm:$0xff]   ;;  %v2404_v61 = vld [vmem:[%s3509_s3 + $0xd8] sm:$0xff]  }
  0x77   : > { %901 = vmatpush1.bf16.msra.mxu0 %v2340_v30  ;;  %1014 = vmatpush1.bf16.msra.mxu1 %v2341_v31  ;;  %v3016_v30 = vld [vmem:[%s3507_s1 + $0x1a8] ss:$16 sps:$4 sm:$0xff]   ;;  %v417_v31 = vmax.f32 %v2988_v20, 0.0 }
  0x78   : > { %902 = vmatprep.subr.bf16.mxu0 %v2342_v32  ;;  %1015 = vmatprep.subr.bf16.mxu1 %v2344_v33  ;;  %v419_v32 = vmax.f32 %v2991_v21, 0.0  ;;  %v416_v33 = vmax.f32 %v2994_v22, 0.0  ;;  %v2397_v57 = vld [vmem:[%s3509_s3 + $0x88] sm:$0xff]   ;;  %v2403_v62 = vld [vmem:[%s3509_s3 + $0x18] sm:$0xff]  }
  0x79   : > { %v2405_v63 = vld [vmem:[%s3509_s3 + $0x98] sm:$0xff]   ;;  %v2410_v6 = vld [vmem:[%s3509_s3 + $0x68] sm:$0xff]  }
  0x7a   : > { %v2412_v7 = vld [vmem:[%s3509_s3 + $0xe8] sm:$0xff]  }
  0x7b   : > { %903 = vmatpush1.bf16.msra.mxu0 %v2346_v34  ;;  %1016 = vmatpush1.bf16.msra.mxu1 %v2347_v35  ;;  %v3022_v34 = vld [vmem:[%s2890_s21 + $0xa0] sm:$0xff]  ;;  %v3025_v35 = vld [vmem:[%s2890_s21 + $0xb0] sm:$0xff]  ;;  %v2411_v8 = vld [vmem:[%s3509_s3 + $0x28] sm:$0xff]  }
  0x7c   : > { %904 = vmatprep.subr.bf16.mxu0 %v2348_v36  ;;  %1017 = vmatprep.subr.bf16.mxu1 %v2350_v37  ;;  %v3028_v36 = vld [vmem:[%s2890_s21 + $0xc8] sm:$0xff]  ;;  %v2378_v37 = vld [vmem:[%s3507_s1 + $0x1c4] ss:$16 sps:$4 sm:$0xff]   ;;  %v3525_v48 = vmax.f32 %v3025_v35, 0.0  ;;  %v3531_v21 = vmax.f32 %v3022_v34, 0.0 }
  0x7d   : > { %v2413_v14 = vld [vmem:[%s3509_s3 + $0xa8] sm:$0xff]  }
  0x7f   : > { %905 = vmatpush1.bf16.msra.mxu0 %v2352_v38  ;;  %1018 = vmatpush1.bf16.msra.mxu1 %v2353_v39  ;;  %v2380_v38 = vld [vmem:[%s3507_s1 + $0x1cc] ss:$16 sps:$4 sm:$0xff]   ;;  %v418_v39 = vmax.f32 %v3000_v26, 0.0 }
  0x80   : > { %906 = vmatprep.subr.bf16.mxu0 %v2354_v40  ;;  %1019 = vmatprep.subr.bf16.mxu1 %v2356_v41  ;;  %v421_v40 = vmax.f32 %v3003_v27, 0.0  ;;  %v398_v41 = vld [vmem:[%s2890_s21 + $0xf0] sm:$0xff] }
  0x81   : > { %v472_v15 = vpack.c.bf16 %v418_v39, %v416_v33 }
  0x82   : > { %v475_v20 = vpack.c.bf16 %v3530_v16, %v421_v40 }
  0x83   : > { %907 = vmatpush1.bf16.msra.mxu0 %v2358_v42  ;;  %1020 = vmatpush1.bf16.msra.mxu1 %v2359_v43  ;;  %v3047_v42 = vld [vmem:[%s2890_s21 + $0xd8] sm:$0xff]  ;;  %v3050_v43 = vld [vmem:[%s2890_s21 + $0xc0] sm:$0xff] }
  0x84   : > { %908 = vmatprep.subr.bf16.mxu0 %v2360_v44  ;;  %1021 = vmatprep.subr.bf16.mxu1 %v2362_v45  ;;  %v3053_v44 = vld [vmem:[%s2890_s21 + $0xd0] sm:$0xff]  ;;  %v3518_v45 = vmax.f32 %v3022_v34, 0.0  ;;  %v3534_v22 = vmax.f32 %v3047_v42, 0.0  ;;  %v2420_v34 = vld [vmem:[%s3509_s3 + $0xf8] sm:$0xff]  }
  0x85   : > { %v3535_v27 = vmax.f32 %v3053_v44, 0.0 }
  0x87   : > { %909 = vmatpush1.bf16.msra.mxu0 %v2364_v46  ;;  %1022 = vmatpush1.bf16.msra.mxu1 %v2365_v47  ;;  %v2382_v46 = vld [vmem:[%s3507_s1 + $0x1c0] ss:$16 sps:$4 sm:$0xff]   ;;  %v428_v47 = vmax.f32 %v396_v2, 0.0  ;;  %v3528_v2 = vmax.f32 %v3053_v44, 0.0 }
  0x88   : > { %910 = vmatprep.subr.bf16.mxu0 %v2366_v49  ;;  %1023 = vmatprep.subr.bf16.mxu1 %v2368_v50  ;;  %v3059_v49 = vld [vmem:[%s2890_s21 + $0xe8] sm:$0xff]  ;;  %v3062_v50 = vld [vmem:[%s2890_s21 + $0xf8] sm:$0xff]  ;;  %v544_v44 = vld [vmem:[#allocation3] sm:$0xf] }
  0x89   : > { %432 = vst [vmem:[%s3041_s16] sm:$0xff] %v400_v59  ;;  %433 = vst [vmem:[%s3041_s16 + $0x8] sm:$0xff] %v401_v52  ;;  %v3527_v52 = vmax.f32 %v3028_v36, 0.0 }
  0x8a   : > { %434 = vst [vmem:[%s3041_s16 + $0x10] sm:$0xff] %v402_v60  ;;  %435 = vst [vmem:[%s3041_s16 + $0x18] sm:$0xff] %v403_v55  ;;  %v430_v55 = vmax.f32 %v398_v41, 0.0  ;;  %v2386_v41 = vld [vmem:[%s3507_s1 + $0x1ec] ss:$16 sps:$4 sm:$0xff]  }
  0x8b   : > { %911 = vmatpush1.bf16.msra.mxu0 %v2370_v0  ;;  %1024 = vmatpush1.bf16.msra.mxu1 %v2371_v1  ;;  %v424_v1 = vmax.f32 %v3050_v43, 0.0  ;;  %v431_v0 = vmax.f32 %v3062_v50, 0.0  ;;  %436 = vst [vmem:[%s3041_s16 + $0x20] sm:$0xff] %v404_v5  ;;  %437 = vst [vmem:[%s3041_s16 + $0x28] sm:$0xff] %v405_v3 }
  0x8c   : > { %912 = vmatprep.subr.bf16.mxu0 %v2372_v9  ;;  %1025 = vmatprep.subr.bf16.mxu1 %v2374_v10  ;;  %v2383_v9 = vld [vmem:[%s3507_s1 + $0x1c8] ss:$16 sps:$4 sm:$0xff]   ;;  %v429_v10 = vmax.f32 %v3059_v49, 0.0  ;;  %438 = vst [vmem:[%s3041_s16 + $0x30] sm:$0xff] %v406_v11  ;;  %439 = vst [vmem:[%s3041_s16 + $0x38] sm:$0xff] %v407_v4 }
  0x8d   : > { %440 = vst [vmem:[%s3041_s16 + $0x40] sm:$0xff] %v408_v17  ;;  %441 = vst [vmem:[%s3041_s16 + $0x48] sm:$0xff] %v409_v12  ;;  %v476_v28 = vpack.c.bf16 %v3535_v27, %v424_v1 }
  0x8e   : > { %442 = vst [vmem:[%s3041_s16 + $0x50] sm:$0xff] %v410_v18  ;;  %443 = vst [vmem:[%s3041_s16 + $0x58] sm:$0xff] %v411_v13 }
  0x8f   : > { %444 = vst [vmem:[%s3041_s16 + $0x60] sm:$0xff] %v412_v24  ;;  %445 = vst [vmem:[%s3041_s16 + $0x68] sm:$0xff] %v413_v19  ;;  %913 = vmatpush1.bf16.msra.mxu0 %v3011_v29  ;;  %1026 = vmatpush1.bf16.msra.mxu1 %v3016_v30  ;;  %v3177_v29 = vpack.c.bf16 %v430_v55, %v428_v47  ;;  %v2388_v30 = vld [vmem:[%s3507_s1 + $0x1e0] ss:$16 sps:$4 sm:$0xff]  }
  0x90   : > { %446 = vst [vmem:[%s3041_s16 + $0x70] sm:$0xff] %v414_v25  ;;  %447 = vst [vmem:[%s3041_s16 + $0x78] sm:$0xff] %v415_v23  ;;  %914 = vmatprep.subr.bf16.mxu0 %v2378_v37  ;;  %1027 = vmatprep.subr.bf16.mxu1 %v2380_v38  ;;  %v2390_v37 = vld [vmem:[%s3509_s3 + $0x40] sm:$0xff]  }
  0x91   : > { %448 = vst [vmem:[%s3041_s16 + $0x80] sm:$0xff] %v416_v33  ;;  %449 = vst [vmem:[%s3041_s16 + $0x88] sm:$0xff] %v417_v31  ;;  %v2392_v38 = vld [vmem:[%s3509_s3 + $0xc0] sm:$0xff]   ;;  %v2418_v33 = vld [vmem:[%s3509_s3 + $0x78] sm:$0xff]  }
  0x92   : > { %450 = vst [vmem:[%s3041_s16 + $0x90] sm:$0xff] %v418_v39  ;;  %451 = vst [vmem:[%s3041_s16 + $0x98] sm:$0xff] %v419_v32  ;;  %v546_v39 = vlaneseq }
  0x93   : > { %452 = vst [vmem:[%s3041_s16 + $0xa0] sm:$0xff] %v3518_v45  ;;  %453 = vst [vmem:[%s3041_s16 + $0xa8] sm:$0xff] %v421_v40  ;;  %v3529_v45 = vmax.f32 %v3047_v42, 0.0  ;;  %915 = vmatpush1.bf16.msra.mxu0 %v2382_v46  ;;  %1028 = vmatpush1.bf16.msra.mxu1 %v2383_v9  ;;  %v2391_v46 = vld [vmem:[%s3509_s3] sm:$0xff]   ;;  %v467_v9 = vpack.c.bf16 %v407_v4, %v405_v3  ;;  %v466_v3 = vpack.c.bf16 %v406_v11, %v404_v5  ;;  %v2399_v4 = vld [vmem:[%s3509_s3 + $0x10] sm:$0xff]  }
  0x94   : > { %454 = vst [vmem:[%s3041_s16 + $0xb0] sm:$0xff] %v3525_v48  ;;  %455 = vst [vmem:[%s3041_s16 + $0xb8] sm:$0xff] %v3526_v51  ;;  %v2384_v48 = vld [vmem:[%s3507_s1 + $0x1e4] ss:$16 sps:$4 sm:$0xff]   ;;  %1029 = vmatprep.subr.bf16.mxu1 %v2386_v41  ;;  %v547_v40 = vshrl.u32 %v546_v39, 7 }
  0x95   : > { %457 = vst [vmem:[%s3041_s16 + $0xc8] sm:$0xff] %v3527_v52  ;;  %456 = vst [vmem:[%s3041_s16 + $0xc0] sm:$0xff] %v424_v1  ;;  %916 = vmatprep.subr.bf16.mxu0 %v2384_v48  ;;  %v2393_v51 = vld [vmem:[%s3509_s3 + $0x80] sm:$0xff]   ;;  %v469_v52 = vpack.c.bf16 %v411_v13, %v409_v12  ;;  %v468_v12 = vpack.c.bf16 %v410_v18, %v408_v17  ;;  %v2414_v17 = vld [vmem:[%s3509_s3 + $0x70] sm:$0xff]  }
  0x96   : > { %458 = vst [vmem:[%s3041_s16 + $0xd0] sm:$0xff] %v3528_v2  ;;  %459 = vst [vmem:[%s3041_s16 + $0xd8] sm:$0xff] %v3529_v45  ;;  %v2389_v45 = vld [vmem:[%s3507_s1 + $0x1e8] ss:$16 sps:$4 sm:$0xff]   ;;  %v2406_v5 = vld [vmem:[%s3509_s3 + $0x60] sm:$0xff]   ;;  %v471_v2 = vpack.c.bf16 %v415_v23, %v413_v19  ;;  %v470_v19 = vpack.c.bf16 %v414_v25, %v412_v24  ;;  %v473_v23 = vpack.c.bf16 %v419_v32, %v417_v31  ;;  %v3532_v24 = vmax.f32 %v3025_v35, 0.0 }
  0x97   : > { %460 = vst [vmem:[%s3041_s16 + $0xe0] sm:$0xff] %v428_v47  ;;  %461 = vst [vmem:[%s3041_s16 + $0xe8] sm:$0xff] %v429_v10  ;;  %v464_v47 = vpack.c.bf16 %v402_v60, %v400_v59  ;;  %917 = vmatpush1.bf16.msra.mxu0 %v2388_v30  ;;  %1030 = vmatpush1.bf16.msra.mxu1 %v2389_v45  ;;  %v2398_v59 = vld [vmem:[%s3509_s3 + $0x50] sm:$0xff]   ;;  %v2408_v11 = vld [vmem:[%s3509_s3 + $0xe0] sm:$0xff]   ;;  %v3533_v31 = vmax.f32 %v3028_v36, 0.0  ;;  %v479_v32 = vpack.c.bf16 %v431_v0, %v429_v10 }
  0x98   : > { %463 = vst [vmem:[%s3041_s16 + $0xf8] sm:$0xff] %v431_v0  ;;  %462 = vst [vmem:[%s3041_s16 + $0xf0] sm:$0xff] %v430_v55  ;;  %2127 = vmatprep.subr.bf16.mxu0 %v2390_v37  ;;  %2191 = vmatprep.subr.bf16.mxu1 %v2392_v38  ;;  %v2400_v60 = vld [vmem:[%s3509_s3 + $0xd0] sm:$0xff]   ;;  %v2407_v13 = vld [vmem:[%s3509_s3 + $0x20] sm:$0xff]   ;;  %v474_v25 = vpack.c.bf16 %v3532_v24, %v3531_v21  ;;  %v548_v42 = vsub.s32 0, %v547_v40  ;;  %v556_v43 = vsub.s32 2, %v547_v40 }
  0x99   : > { %v2401_v55 = vld [vmem:[%s3509_s3 + $0x90] sm:$0xff]   ;;  %v2409_v48 = vld [vmem:[%s3509_s3 + $0xa0] sm:$0xff]   ;;  %v477_v26 = vpack.c.bf16 %v3534_v22, %v3533_v31  ;;  %v2419_v35 = vld [vmem:[%s3509_s3 + $0x38] sm:$0xff]   ;;  %v552_v49 = vsub.s32 1, %v547_v40  ;;  %v560_v50 = vsub.s32 3, %v547_v40 }
  0x9a   : > { %919 = vmatmul.mubr.bf16.vlgmr.msra.gmra.mrb[0].mxu0 %v464_v47  ;;  %1032 = vmatmul.mubr.bf16.vlgmr.msra.gmra.mrb[0].mxu1 %v464_v47  ;;  %v2416_v18 = vld [vmem:[%s3509_s3 + $0xf0] sm:$0xff]   ;;  %v2421_v36 = vld [vmem:[%s3509_s3 + $0xb8] sm:$0xff]   ;;  %v3339_v0 = vrot.slane %v544_v44, %v548_v42  ;;  %v3341_v1 = vrot.slane %v544_v44, %v556_v43 }
  0x9b   : > { %928 = vmatprep.mubr.bf16.mxu0 %v467_v9  ;;  %1041 = vmatprep.mubr.bf16.mxu1 %v467_v9  ;;  %v2415_v41 = vld [vmem:[%s3509_s3 + $0x30] sm:$0xff]   ;;  %v3343_v10 = vrot.slane %v544_v44, %v552_v49 }
  0x9c   : > { %2128 = vmatpush3.bf16.msra.mxu0 %v2391_v46  ;;  %2192 = vmatpush3.bf16.msra.mxu1 %v2393_v51  ;;  %v2417_v30 = vld [vmem:[%s3509_s3 + $0xb0] sm:$0xff]  }
  0x9d   : > { %2129 = vmatprep.subr.bf16.mxu0 %v2394_v53  ;;  %2193 = vmatprep.subr.bf16.mxu1 %v2396_v54 }
  0xa0   : > { %2130 = vmatpush3.bf16.msra.mxu0 %v2395_v56  ;;  %2194 = vmatpush3.bf16.msra.mxu1 %v2397_v57 }
  0xa1   : > { %2131 = vmatprep.subr.bf16.mxu0 %v2398_v59  ;;  %2195 = vmatprep.subr.bf16.mxu1 %v2400_v60 }
  0xa2   : > { %929 = vmatmul.mubr.bf16.gmra.mrb[4].mxu0 %v466_v3  ;;  %1042 = vmatmul.mubr.bf16.gmra.mrb[4].mxu1 %v466_v3 }
  0xa3   : > { %938 = vmatprep.mubr.bf16.mxu0 %v469_v52  ;;  %1051 = vmatprep.mubr.bf16.mxu1 %v469_v52 }
  0xa4   : > { %2132 = vmatpush3.bf16.msra.mxu0 %v2399_v4  ;;  %2196 = vmatpush3.bf16.msra.mxu1 %v2401_v55 }
  0xa5   : > { %2133 = vmatprep.subr.bf16.mxu0 %v2402_v58  ;;  %2197 = vmatprep.subr.bf16.mxu1 %v2404_v61 }
  0xa8   : > { %2134 = vmatpush3.bf16.msra.mxu0 %v2403_v62  ;;  %2198 = vmatpush3.bf16.msra.mxu1 %v2405_v63 }
  0xa9   : > { %2135 = vmatprep.subr.bf16.mxu0 %v2406_v5  ;;  %2199 = vmatprep.subr.bf16.mxu1 %v2408_v11 }
  0xaa   : > { %939 = vmatmul.mubr.bf16.gmra.mrb[8].mxu0 %v468_v12  ;;  %1052 = vmatmul.mubr.bf16.gmra.mrb[8].mxu1 %v468_v12 }
  0xab   : > { %948 = vmatprep.mubr.bf16.mxu0 %v471_v2  ;;  %1061 = vmatprep.mubr.bf16.mxu1 %v471_v2 }
  0xac   : > { %2136 = vmatpush3.bf16.msra.mxu0 %v2407_v13  ;;  %2200 = vmatpush3.bf16.msra.mxu1 %v2409_v48 }
  0xad   : > { %2137 = vmatprep.subr.bf16.mxu0 %v2410_v6  ;;  %2201 = vmatprep.subr.bf16.mxu1 %v2412_v7 }
  0xb0   : > { %2138 = vmatpush3.bf16.msra.mxu0 %v2411_v8  ;;  %2202 = vmatpush3.bf16.msra.mxu1 %v2413_v14 }
  0xb1   : > { %2139 = vmatprep.subr.bf16.mxu0 %v2414_v17  ;;  %2203 = vmatprep.subr.bf16.mxu1 %v2416_v18 }
  0xb2   : > { %949 = vmatmul.mubr.bf16.gmra.mrb[12].mxu0 %v470_v19  ;;  %1062 = vmatmul.mubr.bf16.gmra.mrb[12].mxu1 %v470_v19 }
  0xb3   : > { %958 = vmatprep.mubr.bf16.mxu0 %v473_v23  ;;  %1071 = vmatprep.mubr.bf16.mxu1 %v473_v23 }
  0xb4   : > { %2140 = vmatpush3.bf16.msra.mxu0 %v2415_v41  ;;  %2204 = vmatpush3.bf16.msra.mxu1 %v2417_v30 }
  0xb5   : > { %2141 = vmatprep.subr.bf16.mxu0 %v2418_v33  ;;  %2205 = vmatprep.subr.bf16.mxu1 %v2420_v34 }
  0xb8   : > { %2142 = vmatpush3.bf16.msra.mxu0 %v2419_v35  ;;  %2206 = vmatpush3.bf16.msra.mxu1 %v2421_v36 }
  0xba   : > { %959 = vmatmul.mubr.bf16.gmra.mrb[16].mxu0 %v472_v15  ;;  %1072 = vmatmul.mubr.bf16.gmra.mrb[16].mxu1 %v472_v15 }
  0xbb   : > { %968 = vmatprep.mubr.bf16.mxu0 %v475_v20  ;;  %1081 = vmatprep.mubr.bf16.mxu1 %v475_v20 }
  0xc2   : > { %969 = vmatmul.mubr.bf16.gmra.mrb[20].mxu0 %v474_v25  ;;  %1082 = vmatmul.mubr.bf16.gmra.mrb[20].mxu1 %v474_v25 }
  0xc3   : > { %978 = vmatprep.mubr.bf16.mxu0 %v477_v26  ;;  %1091 = vmatprep.mubr.bf16.mxu1 %v477_v26 }
  0xca   : > { %979 = vmatmul.mubr.bf16.gmra.mrb[24].mxu0 %v476_v28  ;;  %1092 = vmatmul.mubr.bf16.gmra.mrb[24].mxu1 %v476_v28 }
  0xcb   : > { %988 = vmatprep.mubr.bf16.mxu0 %v479_v32  ;;  %1101 = vmatprep.mubr.bf16.mxu1 %v479_v32 }
  0xd2   : > { %989 = vmatmul.mubr.bf16.gmra.mrb[28].mxu0 %v3177_v29  ;;  %1102 = vmatmul.mubr.bf16.gmra.mrb[28].mxu1 %v3177_v29  ;;  %v3345_v29 = vrot.slane %v544_v44, %v560_v50 }
 0x16d   : > { %v920_v45 = vpop.f32.mrb[0].mxu0  ;;  %v1033_v37 = vpop.f32.mrb[0].mxu1 }
 0x16e   : > { %v921_v38 = vadd.f32 %v920_v45, %v3339_v0  ;;  %v1034_v47 = vadd.f32 %v1033_v37, %v3341_v1  ;;  %v922_v46 = vpop.f32.mrb[1].mxu0  ;;  %v1035_v9 = vpop.f32.mrb[1].mxu1 }
 0x16f   : > { %v923_v51 = vadd.f32 %v922_v46, %v3343_v10  ;;  %v1036_v53 = vadd.f32 %v1035_v9, %v3345_v29  ;;  %v924_v54 = vpop.f32.mrb[2].mxu0  ;;  %v1037_v56 = vpop.f32.mrb[2].mxu1 }
 0x170   : > { %v1114_v57 = vmax.f32 %v1034_v47, 0.0  ;;  %v925_v59 = vadd.f32 %v924_v54, %v3339_v0  ;;  %v1038_v60 = vadd.f32 %v1037_v56, %v3341_v1  ;;  %v926_v3 = vpop.f32.mrb[3].mxu0  ;;  %v1039_v4 = vpop.f32.mrb[3].mxu1  ;;  %v1112_v61 = vmax.f32 %v921_v38, 0.0 }
 0x171   : > { %v1115_v52 = vmax.f32 %v1036_v53, 0.0  ;;  %v927_v55 = vadd.f32 %v926_v3, %v3343_v10  ;;  %v1040_v58 = vadd.f32 %v1039_v4, %v3345_v29  ;;  %v1113_v5 = vmax.f32 %v923_v51, 0.0 }
 0x172   : > { %v1116_v62 = vmax.f32 %v925_v59, 0.0  ;;  %v1118_v63 = vmax.f32 %v1038_v60, 0.0 }
 0x173   : > { %v1117_v11 = vmax.f32 %v927_v55, 0.0  ;;  %v1119_v12 = vmax.f32 %v1040_v58, 0.0 }
 0x174   : > { %v1176_v13 = vpack.c.bf16 %v1116_v62, %v1112_v61  ;;  %v1178_v2 = vpack.c.bf16 %v1118_v63, %v1114_v57 }
 0x175   : > { %v1177_v48 = vpack.c.bf16 %v1117_v11, %v1113_v5  ;;  %v1179_v6 = vpack.c.bf16 %v1119_v12, %v1115_v52  ;;  %v930_v7 = vpop.f32.mrb[4].mxu0  ;;  %v1043_v8 = vpop.f32.mrb[4].mxu1 }
 0x176   : > { %v931_v14 = vadd.f32 %v930_v7, %v3339_v0  ;;  %v1044_v17 = vadd.f32 %v1043_v8, %v3341_v1  ;;  %v932_v18 = vpop.f32.mrb[5].mxu0  ;;  %v1045_v19 = vpop.f32.mrb[5].mxu1 }
 0x177   : > { %v933_v23 = vadd.f32 %v932_v18, %v3343_v10  ;;  %v1046_v41 = vadd.f32 %v1045_v19, %v3345_v29  ;;  %v934_v30 = vpop.f32.mrb[6].mxu0  ;;  %v1047_v15 = vpop.f32.mrb[6].mxu1  ;;  %1503 = vmatprep.mubr.bf16.mxu0 %v1177_v48  ;;  %1600 = vmatprep.mubr.bf16.mxu1 %v1179_v6 }
 0x178   : > { %v1122_v16 = vmax.f32 %v1044_v17, 0.0  ;;  %v935_v20 = vadd.f32 %v934_v30, %v3339_v0  ;;  %v1048_v21 = vadd.f32 %v1047_v15, %v3341_v1  ;;  %v936_v24 = vpop.f32.mrb[7].mxu0  ;;  %v1049_v25 = vpop.f32.mrb[7].mxu1  ;;  %1504 = vmatmul.mubr.bf16.vlgmr.msra.gmra.mrb[32].mxu0 %v1176_v13  ;;  %1601 = vmatmul.mubr.bf16.vlgmr.msra.gmra.mrb[32].mxu1 %v1178_v2  ;;  %v1120_v27 = vmax.f32 %v931_v14, 0.0 }
 0x179   : > { %v1123_v31 = vmax.f32 %v1046_v41, 0.0  ;;  %v937_v22 = vadd.f32 %v936_v24, %v3343_v10  ;;  %v1050_v26 = vadd.f32 %v1049_v25, %v3345_v29  ;;  %v1121_v33 = vmax.f32 %v933_v23, 0.0 }
 0x17a   : > { %v1124_v28 = vmax.f32 %v935_v20, 0.0  ;;  %v1126_v32 = vmax.f32 %v1048_v21, 0.0 }
 0x17b   : > { %v1125_v34 = vmax.f32 %v937_v22, 0.0  ;;  %v1127_v35 = vmax.f32 %v1050_v26, 0.0 }
 0x17c   : > { %v1180_v36 = vpack.c.bf16 %v1124_v28, %v1120_v27  ;;  %v1182_v39 = vpack.c.bf16 %v1126_v32, %v1122_v16 }
 0x17d   : > { %v1181_v40 = vpack.c.bf16 %v1125_v34, %v1121_v33  ;;  %v1183_v42 = vpack.c.bf16 %v1127_v35, %v1123_v31  ;;  %v940_v43 = vpop.f32.mrb[8].mxu0  ;;  %v1053_v44 = vpop.f32.mrb[8].mxu1 }
 0x17e   : > { %v941_v49 = vadd.f32 %v940_v43, %v3339_v0  ;;  %v1054_v50 = vadd.f32 %v1053_v44, %v3341_v1  ;;  %v942_v45 = vpop.f32.mrb[9].mxu0  ;;  %v1055_v37 = vpop.f32.mrb[9].mxu1 }
 0x17f   : > { %v943_v38 = vadd.f32 %v942_v45, %v3343_v10  ;;  %v1056_v47 = vadd.f32 %v1055_v37, %v3345_v29  ;;  %v944_v46 = vpop.f32.mrb[10].mxu0  ;;  %v1057_v9 = vpop.f32.mrb[10].mxu1  ;;  %1511 = vmatprep.mubr.bf16.mxu0 %v1181_v40  ;;  %1608 = vmatprep.mubr.bf16.mxu1 %v1183_v42 }
 0x180   : > { %v1130_v51 = vmax.f32 %v1054_v50, 0.0  ;;  %v945_v53 = vadd.f32 %v944_v46, %v3339_v0  ;;  %v1058_v54 = vadd.f32 %v1057_v9, %v3341_v1  ;;  %v946_v56 = vpop.f32.mrb[11].mxu0  ;;  %v1059_v57 = vpop.f32.mrb[11].mxu1  ;;  %1512 = vmatmul.mubr.bf16.gmra.mrb[36].mxu0 %v1180_v36  ;;  %1609 = vmatmul.mubr.bf16.gmra.mrb[36].mxu1 %v1182_v39  ;;  %v1128_v4 = vmax.f32 %v941_v49, 0.0 }
 0x181   : > { %v1131_v59 = vmax.f32 %v1056_v47, 0.0  ;;  %v947_v60 = vadd.f32 %v946_v56, %v3343_v10  ;;  %v1060_v3 = vadd.f32 %v1059_v57, %v3345_v29  ;;  %v1129_v58 = vmax.f32 %v943_v38, 0.0 }
 0x182   : > { %v1132_v52 = vmax.f32 %v945_v53, 0.0  ;;  %v1134_v55 = vmax.f32 %v1058_v54, 0.0 }
 0x183   : > { %v1133_v61 = vmax.f32 %v947_v60, 0.0  ;;  %v1135_v62 = vmax.f32 %v1060_v3, 0.0 }
 0x184   : > { %v1184_v63 = vpack.c.bf16 %v1132_v52, %v1128_v4  ;;  %v1186_v5 = vpack.c.bf16 %v1134_v55, %v1130_v51 }
 0x185   : > { %v1185_v11 = vpack.c.bf16 %v1133_v61, %v1129_v58  ;;  %v1187_v12 = vpack.c.bf16 %v1135_v62, %v1131_v59  ;;  %v950_v13 = vpop.f32.mrb[12].mxu0  ;;  %v1063_v2 = vpop.f32.mrb[12].mxu1 }
 0x186   : > { %v951_v48 = vadd.f32 %v950_v13, %v3339_v0  ;;  %v1064_v6 = vadd.f32 %v1063_v2, %v3341_v1  ;;  %v952_v7 = vpop.f32.mrb[13].mxu0  ;;  %v1065_v8 = vpop.f32.mrb[13].mxu1 }
 0x187   : > { %v953_v14 = vadd.f32 %v952_v7, %v3343_v10  ;;  %v1066_v17 = vadd.f32 %v1065_v8, %v3345_v29  ;;  %v954_v18 = vpop.f32.mrb[14].mxu0  ;;  %v1067_v19 = vpop.f32.mrb[14].mxu1  ;;  %1519 = vmatprep.mubr.bf16.mxu0 %v1185_v11  ;;  %1616 = vmatprep.mubr.bf16.mxu1 %v1187_v12 }
 0x188   : > { %v1138_v23 = vmax.f32 %v1064_v6, 0.0  ;;  %v955_v41 = vadd.f32 %v954_v18, %v3339_v0  ;;  %v1068_v30 = vadd.f32 %v1067_v19, %v3341_v1  ;;  %v956_v15 = vpop.f32.mrb[15].mxu0  ;;  %v1069_v16 = vpop.f32.mrb[15].mxu1  ;;  %1520 = vmatmul.mubr.bf16.gmra.mrb[40].mxu0 %v1184_v63  ;;  %1617 = vmatmul.mubr.bf16.gmra.mrb[40].mxu1 %v1186_v5  ;;  %v1136_v25 = vmax.f32 %v951_v48, 0.0 }
 0x189   : > { %v1139_v20 = vmax.f32 %v1066_v17, 0.0  ;;  %v957_v21 = vadd.f32 %v956_v15, %v3343_v10  ;;  %v1070_v24 = vadd.f32 %v1069_v16, %v3345_v29  ;;  %v1137_v26 = vmax.f32 %v953_v14, 0.0 }
 0x18a   : > { %v1140_v31 = vmax.f32 %v955_v41, 0.0  ;;  %v1142_v22 = vmax.f32 %v1068_v30, 0.0 }
 0x18b   : > { %v1141_v27 = vmax.f32 %v957_v21, 0.0  ;;  %v1143_v28 = vmax.f32 %v1070_v24, 0.0 }
 0x18c   : > { %v1188_v32 = vpack.c.bf16 %v1140_v31, %v1136_v25  ;;  %v1190_v33 = vpack.c.bf16 %v1142_v22, %v1138_v23 }
 0x18d   : > { %v1189_v34 = vpack.c.bf16 %v1141_v27, %v1137_v26  ;;  %v1191_v35 = vpack.c.bf16 %v1143_v28, %v1139_v20  ;;  %v960_v36 = vpop.f32.mrb[16].mxu0  ;;  %v1073_v39 = vpop.f32.mrb[16].mxu1 }
 0x18e   : > { %v961_v40 = vadd.f32 %v960_v36, %v3339_v0  ;;  %v1074_v42 = vadd.f32 %v1073_v39, %v3341_v1  ;;  %v962_v43 = vpop.f32.mrb[17].mxu0  ;;  %v1075_v44 = vpop.f32.mrb[17].mxu1 }
 0x18f   : > { %v963_v49 = vadd.f32 %v962_v43, %v3343_v10  ;;  %v1076_v50 = vadd.f32 %v1075_v44, %v3345_v29  ;;  %v964_v45 = vpop.f32.mrb[18].mxu0  ;;  %v1077_v37 = vpop.f32.mrb[18].mxu1  ;;  %1527 = vmatprep.mubr.bf16.mxu0 %v1189_v34  ;;  %1624 = vmatprep.mubr.bf16.mxu1 %v1191_v35 }
 0x190   : > { %v1146_v38 = vmax.f32 %v1074_v42, 0.0  ;;  %v965_v47 = vadd.f32 %v964_v45, %v3339_v0  ;;  %v1078_v46 = vadd.f32 %v1077_v37, %v3341_v1  ;;  %v966_v9 = vpop.f32.mrb[19].mxu0  ;;  %v1079_v51 = vpop.f32.mrb[19].mxu1  ;;  %1528 = vmatmul.mubr.bf16.gmra.mrb[44].mxu0 %v1188_v32  ;;  %1625 = vmatmul.mubr.bf16.gmra.mrb[44].mxu1 %v1190_v33  ;;  %v1144_v57 = vmax.f32 %v961_v40, 0.0 }
 0x191   : > { %v1147_v53 = vmax.f32 %v1076_v50, 0.0  ;;  %v967_v54 = vadd.f32 %v966_v9, %v3343_v10  ;;  %v1080_v56 = vadd.f32 %v1079_v51, %v3345_v29  ;;  %v1145_v3 = vmax.f32 %v963_v49, 0.0 }
 0x192   : > { %v1148_v59 = vmax.f32 %v965_v47, 0.0  ;;  %v1150_v60 = vmax.f32 %v1078_v46, 0.0 }
 0x193   : > { %v1149_v4 = vmax.f32 %v967_v54, 0.0  ;;  %v1151_v52 = vmax.f32 %v1080_v56, 0.0 }
 0x194   : > { %v1192_v55 = vpack.c.bf16 %v1148_v59, %v1144_v57  ;;  %v1194_v58 = vpack.c.bf16 %v1150_v60, %v1146_v38 }
 0x195   : > { %v1193_v61 = vpack.c.bf16 %v1149_v4, %v1145_v3  ;;  %v1195_v62 = vpack.c.bf16 %v1151_v52, %v1147_v53  ;;  %v970_v63 = vpop.f32.mrb[20].mxu0  ;;  %v1083_v5 = vpop.f32.mrb[20].mxu1 }
 0x196   : > { %v971_v11 = vadd.f32 %v970_v63, %v3339_v0  ;;  %v1084_v12 = vadd.f32 %v1083_v5, %v3341_v1  ;;  %v972_v13 = vpop.f32.mrb[21].mxu0  ;;  %v1085_v2 = vpop.f32.mrb[21].mxu1 }
 0x197   : > { %v973_v48 = vadd.f32 %v972_v13, %v3343_v10  ;;  %v1086_v6 = vadd.f32 %v1085_v2, %v3345_v29  ;;  %v974_v7 = vpop.f32.mrb[22].mxu0  ;;  %v1087_v8 = vpop.f32.mrb[22].mxu1  ;;  %1535 = vmatprep.mubr.bf16.mxu0 %v1193_v61  ;;  %1632 = vmatprep.mubr.bf16.mxu1 %v1195_v62 }
 0x198   : > { %v1154_v14 = vmax.f32 %v1084_v12, 0.0  ;;  %v975_v17 = vadd.f32 %v974_v7, %v3339_v0  ;;  %v1088_v18 = vadd.f32 %v1087_v8, %v3341_v1  ;;  %v976_v19 = vpop.f32.mrb[23].mxu0  ;;  %v1089_v23 = vpop.f32.mrb[23].mxu1  ;;  %1536 = vmatmul.mubr.bf16.gmra.mrb[48].mxu0 %v1192_v55  ;;  %1633 = vmatmul.mubr.bf16.gmra.mrb[48].mxu1 %v1194_v58  ;;  %v1152_v16 = vmax.f32 %v971_v11, 0.0 }
 0x199   : > { %v1155_v41 = vmax.f32 %v1086_v6, 0.0  ;;  %v977_v30 = vadd.f32 %v976_v19, %v3343_v10  ;;  %v1090_v15 = vadd.f32 %v1089_v23, %v3345_v29  ;;  %v1153_v24 = vmax.f32 %v973_v48, 0.0 }
 0x19a   : > { %v1156_v20 = vmax.f32 %v975_v17, 0.0  ;;  %v1158_v21 = vmax.f32 %v1088_v18, 0.0 }
 0x19b   : > { %v1157_v25 = vmax.f32 %v977_v30, 0.0  ;;  %v1159_v31 = vmax.f32 %v1090_v15, 0.0 }
 0x19c   : > { %v1196_v22 = vpack.c.bf16 %v1156_v20, %v1152_v16  ;;  %v1198_v26 = vpack.c.bf16 %v1158_v21, %v1154_v14 }
 0x19d   : > { %v1197_v27 = vpack.c.bf16 %v1157_v25, %v1153_v24  ;;  %v1199_v28 = vpack.c.bf16 %v1159_v31, %v1155_v41  ;;  %v980_v32 = vpop.f32.mrb[24].mxu0  ;;  %v1093_v33 = vpop.f32.mrb[24].mxu1 }
 0x19e   : > { %v981_v34 = vadd.f32 %v980_v32, %v3339_v0  ;;  %v1094_v35 = vadd.f32 %v1093_v33, %v3341_v1  ;;  %v982_v36 = vpop.f32.mrb[25].mxu0  ;;  %v1095_v39 = vpop.f32.mrb[25].mxu1 }
 0x19f   : > { %v983_v40 = vadd.f32 %v982_v36, %v3343_v10  ;;  %v1096_v42 = vadd.f32 %v1095_v39, %v3345_v29  ;;  %v984_v43 = vpop.f32.mrb[26].mxu0  ;;  %v1097_v44 = vpop.f32.mrb[26].mxu1  ;;  %1543 = vmatprep.mubr.bf16.mxu0 %v1197_v27  ;;  %1640 = vmatprep.mubr.bf16.mxu1 %v1199_v28 }
 0x1a0   : > { %v1162_v49 = vmax.f32 %v1094_v35, 0.0  ;;  %v985_v50 = vadd.f32 %v984_v43, %v3339_v0  ;;  %v1098_v45 = vadd.f32 %v1097_v44, %v3341_v1  ;;  %v986_v37 = vpop.f32.mrb[27].mxu0  ;;  %v1099_v38 = vpop.f32.mrb[27].mxu1  ;;  %1544 = vmatmul.mubr.bf16.gmra.mrb[52].mxu0 %v1196_v22  ;;  %1641 = vmatmul.mubr.bf16.gmra.mrb[52].mxu1 %v1198_v26  ;;  %v1160_v51 = vmax.f32 %v981_v34, 0.0  ;;  %v3411_v22 = vld [vmem:[#allocation5] ss:$0 sm:$0xff] }
 0x1a1   : > { %v1163_v47 = vmax.f32 %v1096_v42, 0.0  ;;  %v987_v46 = vadd.f32 %v986_v37, %v3343_v10  ;;  %v1100_v9 = vadd.f32 %v1099_v38, %v3345_v29  ;;  %v1161_v56 = vmax.f32 %v983_v40, 0.0  ;;  %v3415_v43 = vld [vmem:[#allocation7] ss:$0 sm:$0xff] }
 0x1a2   : > { %v1164_v53 = vmax.f32 %v985_v50, 0.0  ;;  %v1166_v54 = vmax.f32 %v1098_v45, 0.0 }
 0x1a3   : > { %v1165_v57 = vmax.f32 %v987_v46, 0.0  ;;  %v1167_v59 = vmax.f32 %v1100_v9, 0.0 }
 0x1a4   : > { %v1200_v60 = vpack.c.bf16 %v1164_v53, %v1160_v51  ;;  %v1202_v3 = vpack.c.bf16 %v1166_v54, %v1162_v49 }
 0x1a5   : > { %v1201_v4 = vpack.c.bf16 %v1165_v57, %v1161_v56  ;;  %v1203_v52 = vpack.c.bf16 %v1167_v59, %v1163_v47  ;;  %v990_v55 = vpop.f32.mrb[28].mxu0  ;;  %v1103_v58 = vpop.f32.mrb[28].mxu1 }
 0x1a6   : > { %v991_v61 = vadd.f32 %v990_v55, %v3339_v0  ;;  %v1104_v62 = vadd.f32 %v1103_v58, %v3341_v1  ;;  %v992_v63 = vpop.f32.mrb[29].mxu0  ;;  %v1105_v5 = vpop.f32.mrb[29].mxu1 }
 0x1a7   : > { %v993_v11 = vadd.f32 %v992_v63, %v3343_v10  ;;  %v1106_v12 = vadd.f32 %v1105_v5, %v3345_v29  ;;  %v994_v13 = vpop.f32.mrb[30].mxu0  ;;  %v1107_v2 = vpop.f32.mrb[30].mxu1  ;;  %1551 = vmatprep.mubr.bf16.mxu0 %v1201_v4  ;;  %1648 = vmatprep.mubr.bf16.mxu1 %v1203_v52 }
 0x1a8   : > { %v1170_v48 = vmax.f32 %v1104_v62, 0.0  ;;  %v995_v6 = vadd.f32 %v994_v13, %v3339_v0  ;;  %v1108_v7 = vadd.f32 %v1107_v2, %v3341_v1  ;;  %v996_v8 = vpop.f32.mrb[31].mxu0  ;;  %v1109_v14 = vpop.f32.mrb[31].mxu1  ;;  %1552 = vmatmul.mubr.bf16.gmra.mrb[56].mxu0 %v1200_v60  ;;  %1649 = vmatmul.mubr.bf16.gmra.mrb[56].mxu1 %v1202_v3  ;;  %v1168_v23 = vmax.f32 %v991_v61, 0.0 }
 0x1a9   : > { %v1171_v17 = vmax.f32 %v1106_v12, 0.0  ;;  %v997_v18 = vadd.f32 %v996_v8, %v3343_v10  ;;  %v1110_v19 = vadd.f32 %v1109_v14, %v3345_v29  ;;  %v1169_v15 = vmax.f32 %v993_v11, 0.0 }
 0x1aa   : > { %v1172_v41 = vmax.f32 %v995_v6, 0.0  ;;  %v1174_v30 = vmax.f32 %v1108_v7, 0.0 }
 0x1ab   : > { %v1173_v16 = vmax.f32 %v997_v18, 0.0  ;;  %v1175_v20 = vmax.f32 %v1110_v19, 0.0 }
 0x1ac   : > { %v1204_v21 = vpack.c.bf16 %v1172_v41, %v1168_v23  ;;  %v1206_v24 = vpack.c.bf16 %v1174_v30, %v1170_v48 }
 0x1ad   : > { %v1205_v0 = vpack.c.bf16 %v1173_v16, %v1169_v15  ;;  %v1207_v25 = vpack.c.bf16 %v1175_v20, %v1171_v17 }
 0x1af   : > { %1559 = vmatprep.mubr.bf16.mxu0 %v1205_v0  ;;  %1656 = vmatprep.mubr.bf16.mxu1 %v1207_v25 }
 0x1b0   : > { %1560 = vmatmul.mubr.bf16.gmra.mrb[60].mxu0 %v1204_v21  ;;  %1657 = vmatmul.mubr.bf16.gmra.mrb[60].mxu1 %v1206_v24 }
 0x24b   : > { %v2143_v1 = vpop.f32.mrb[32].mxu0  ;;  %v2207_v31 = vpop.f32.mrb[32].mxu1 }
 0x24c   : > { %v2144_v10 = vpop.f32.mrb[33].mxu0  ;;  %v2208_v29 = vpop.f32.mrb[33].mxu1 }
 0x24d   : > { %v2145_v26 = vadd.f32 %v2144_v10, %v2143_v1  ;;  %v2209_v27 = vadd.f32 %v2208_v29, %v2207_v31  ;;  %v2146_v28 = vpop.f32.mrb[34].mxu0  ;;  %v2210_v32 = vpop.f32.mrb[34].mxu1 }
 0x24e   : > { %v2147_v33 = vpop.f32.mrb[35].mxu0  ;;  %v2211_v34 = vpop.f32.mrb[35].mxu1 }
 0x24f   : > { %v1506_v35 = vadd.f32 %v2145_v26, %v3411_v22  ;;  %v2148_v36 = vadd.f32 %v2147_v33, %v2146_v28  ;;  %v2212_v39 = vadd.f32 %v2211_v34, %v2210_v32 }
 0x251   : > { %v1509_v40 = vadd.f32 %v2148_v36, %v3411_v22  ;;  %v1603_v42 = vadd.f32 %v2209_v27, %v1506_v35 }
 0x253   : > { %v1606_v44 = vadd.f32 %v2212_v39, %v1509_v40  ;;  %v2149_v49 = vpop.f32.mrb[36].mxu0  ;;  %v2213_v50 = vpop.f32.mrb[36].mxu1  ;;  %v1665_v45 = vmax.f32 %v1603_v42, 0.0 }
 0x254   : > { %v2150_v37 = vpop.f32.mrb[37].mxu0  ;;  %v2214_v38 = vpop.f32.mrb[37].mxu1 }
 0x255   : > { %v1666_v47 = vmax.f32 %v1606_v44, 0.0  ;;  %v2151_v46 = vadd.f32 %v2150_v37, %v2149_v49  ;;  %v2215_v9 = vadd.f32 %v2214_v38, %v2213_v50  ;;  %v2152_v51 = vpop.f32.mrb[38].mxu0  ;;  %v2216_v53 = vpop.f32.mrb[38].mxu1  ;;  %v1688_v54 = vmul.f32 %v3415_v43, %v1665_v45 }
 0x256   : > { %v2153_v56 = vpop.f32.mrb[39].mxu0  ;;  %v2217_v57 = vpop.f32.mrb[39].mxu1 }
 0x257   : > { %v1514_v59 = vadd.f32 %v2151_v46, %v3411_v22  ;;  %v2154_v60 = vadd.f32 %v2153_v56, %v2152_v51  ;;  %v2218_v3 = vadd.f32 %v2217_v57, %v2216_v53  ;;  %1704 = vadd.xlane.f32.xlu0 %v1688_v54  ;;  %v1689_v52 = vmul.f32 %v3415_v43, %v1666_v47 }
 0x259   : > { %v1517_v4 = vadd.f32 %v2154_v60, %v3411_v22  ;;  %v1611_v55 = vadd.f32 %v2215_v9, %v1514_v59 }
 0x25b   : > { %v1614_v58 = vadd.f32 %v2218_v3, %v1517_v4  ;;  %v2155_v61 = vpop.f32.mrb[40].mxu0  ;;  %v2219_v62 = vpop.f32.mrb[40].mxu1  ;;  %1706 = vadd.xlane.f32.xlu0 %v1689_v52  ;;  %v1667_v63 = vmax.f32 %v1611_v55, 0.0 }
 0x25c   : > { %v2156_v5 = vpop.f32.mrb[41].mxu0  ;;  %v2220_v11 = vpop.f32.mrb[41].mxu1 }
 0x25d   : > { %v1668_v12 = vmax.f32 %v1614_v58, 0.0  ;;  %v2157_v13 = vadd.f32 %v2156_v5, %v2155_v61  ;;  %v2221_v2 = vadd.f32 %v2220_v11, %v2219_v62  ;;  %v2158_v48 = vpop.f32.mrb[42].mxu0  ;;  %v2222_v6 = vpop.f32.mrb[42].mxu1  ;;  %v1690_v7 = vmul.f32 %v3415_v43, %v1667_v63 }
 0x25e   : > { %v2159_v8 = vpop.f32.mrb[43].mxu0  ;;  %v2223_v14 = vpop.f32.mrb[43].mxu1 }
 0x25f   : > { %v1522_v17 = vadd.f32 %v2157_v13, %v3411_v22  ;;  %v2160_v18 = vadd.f32 %v2159_v8, %v2158_v48  ;;  %v2224_v19 = vadd.f32 %v2223_v14, %v2222_v6  ;;  %1708 = vadd.xlane.f32.xlu1 %v1690_v7  ;;  %v1691_v30 = vmul.f32 %v3415_v43, %v1668_v12 }
 0x261   : > { %v1619_v23 = vadd.f32 %v2221_v2, %v1522_v17  ;;  %v1525_v41 = vadd.f32 %v2160_v18, %v3411_v22 }
 0x263   : > { %v1669_v15 = vmax.f32 %v1619_v23, 0.0  ;;  %v1622_v16 = vadd.f32 %v2224_v19, %v1525_v41  ;;  %v2161_v20 = vpop.f32.mrb[44].mxu0  ;;  %v2225_v21 = vpop.f32.mrb[44].mxu1  ;;  %1710 = vadd.xlane.f32.xlu1 %v1691_v30 }
 0x264   : > { %v2162_v24 = vpop.f32.mrb[45].mxu0  ;;  %v2226_v0 = vpop.f32.mrb[45].mxu1 }
 0x265   : > { %v1670_v25 = vmax.f32 %v1622_v16, 0.0  ;;  %v2163_v1 = vadd.f32 %v2162_v24, %v2161_v20  ;;  %v2227_v31 = vadd.f32 %v2226_v0, %v2225_v21  ;;  %v2164_v10 = vpop.f32.mrb[46].mxu0  ;;  %v2228_v29 = vpop.f32.mrb[46].mxu1  ;;  %v1692_v26 = vmul.f32 %v3415_v43, %v1669_v15 }
 0x266   : > { %v2165_v27 = vpop.f32.mrb[47].mxu0  ;;  %v2229_v28 = vpop.f32.mrb[47].mxu1 }
 0x267   : > { %v1530_v32 = vadd.f32 %v2163_v1, %v3411_v22  ;;  %v2166_v33 = vadd.f32 %v2165_v27, %v2164_v10  ;;  %v2230_v34 = vadd.f32 %v2229_v28, %v2228_v29  ;;  %1712 = vadd.xlane.f32.xlu0 %v1692_v26  ;;  %v1693_v35 = vmul.f32 %v3415_v43, %v1670_v25 }
 0x269   : > { %v1627_v36 = vadd.f32 %v2227_v31, %v1530_v32  ;;  %v1533_v39 = vadd.f32 %v2166_v33, %v3411_v22  ;;  %1714 = vadd.xlane.f32.xlu1 %v1693_v35 }
 0x26b   : > { %v1671_v40 = vmax.f32 %v1627_v36, 0.0  ;;  %v1630_v42 = vadd.f32 %v2230_v34, %v1533_v39  ;;  %v2167_v44 = vpop.f32.mrb[48].mxu0  ;;  %v2231_v49 = vpop.f32.mrb[48].mxu1 }
 0x26c   : > { %v2168_v50 = vpop.f32.mrb[49].mxu0  ;;  %v2232_v45 = vpop.f32.mrb[49].mxu1 }
 0x26d   : > { %v1672_v37 = vmax.f32 %v1630_v42, 0.0  ;;  %v2169_v38 = vadd.f32 %v2168_v50, %v2167_v44  ;;  %v2233_v47 = vadd.f32 %v2232_v45, %v2231_v49  ;;  %v2170_v46 = vpop.f32.mrb[50].mxu0  ;;  %v2234_v9 = vpop.f32.mrb[50].mxu1  ;;  %v1694_v51 = vmul.f32 %v3415_v43, %v1671_v40 }
 0x26e   : > { %v2171_v53 = vpop.f32.mrb[51].mxu0  ;;  %v2235_v54 = vpop.f32.mrb[51].mxu1 }
 0x26f   : > { %v1538_v56 = vadd.f32 %v2169_v38, %v3411_v22  ;;  %v2172_v57 = vadd.f32 %v2171_v53, %v2170_v46  ;;  %v2236_v59 = vadd.f32 %v2235_v54, %v2234_v9  ;;  %1716 = vadd.xlane.f32.xlu0 %v1694_v51  ;;  %v1695_v60 = vmul.f32 %v3415_v43, %v1672_v37 }
 0x271   : > { %v1635_v3 = vadd.f32 %v2233_v47, %v1538_v56  ;;  %v1541_v4 = vadd.f32 %v2172_v57, %v3411_v22  ;;  %1718 = vadd.xlane.f32.xlu1 %v1695_v60 }
 0x273   : > { %v1673_v52 = vmax.f32 %v1635_v3, 0.0  ;;  %v1638_v55 = vadd.f32 %v2236_v59, %v1541_v4  ;;  %v2173_v58 = vpop.f32.mrb[52].mxu0  ;;  %v2237_v61 = vpop.f32.mrb[52].mxu1 }
 0x274   : > { %v2174_v62 = vpop.f32.mrb[53].mxu0  ;;  %v2238_v63 = vpop.f32.mrb[53].mxu1 }
 0x275   : > { %v1674_v5 = vmax.f32 %v1638_v55, 0.0  ;;  %v2175_v11 = vadd.f32 %v2174_v62, %v2173_v58  ;;  %v2239_v12 = vadd.f32 %v2238_v63, %v2237_v61  ;;  %v2176_v13 = vpop.f32.mrb[54].mxu0  ;;  %v2240_v2 = vpop.f32.mrb[54].mxu1  ;;  %v1696_v48 = vmul.f32 %v3415_v43, %v1673_v52 }
 0x276   : > { %v2177_v6 = vpop.f32.mrb[55].mxu0  ;;  %v2241_v7 = vpop.f32.mrb[55].mxu1  ;;  %v3447_v61 = vstv %s1736_s26 }
 0x277   : > { %v1546_v8 = vadd.f32 %v2175_v11, %v3411_v22  ;;  %v2178_v14 = vadd.f32 %v2177_v6, %v2176_v13  ;;  %v2242_v17 = vadd.f32 %v2241_v7, %v2240_v2  ;;  %1720 = vadd.xlane.f32.xlu0 %v1696_v48  ;;  %v1697_v18 = vmul.f32 %v3415_v43, %v1674_v5 }
 0x279   : > { %v1643_v19 = vadd.f32 %v2239_v12, %v1546_v8  ;;  %v1549_v23 = vadd.f32 %v2178_v14, %v3411_v22  ;;  %1722 = vadd.xlane.f32.xlu1 %v1697_v18 }
 0x27b   : > { %v1675_v41 = vmax.f32 %v1643_v19, 0.0  ;;  %v1646_v30 = vadd.f32 %v2242_v17, %v1549_v23  ;;  %v2179_v15 = vpop.f32.mrb[56].mxu0  ;;  %v2243_v16 = vpop.f32.mrb[56].mxu1 }
 0x27c   : > { %v2180_v20 = vpop.f32.mrb[57].mxu0  ;;  %v2244_v21 = vpop.f32.mrb[57].mxu1 }
 0x27d   : > { %v1676_v24 = vmax.f32 %v1646_v30, 0.0  ;;  %v2181_v0 = vadd.f32 %v2180_v20, %v2179_v15  ;;  %v2245_v25 = vadd.f32 %v2244_v21, %v2243_v16  ;;  %v2182_v1 = vpop.f32.mrb[58].mxu0  ;;  %v2246_v31 = vpop.f32.mrb[58].mxu1  ;;  %v1698_v10 = vmul.f32 %v3415_v43, %v1675_v41 }
 0x27e   : > { %v2183_v29 = vpop.f32.mrb[59].mxu0  ;;  %v2247_v26 = vpop.f32.mrb[59].mxu1 }
 0x27f   : > { %v1554_v27 = vadd.f32 %v2181_v0, %v3411_v22  ;;  %v2184_v28 = vadd.f32 %v2183_v29, %v2182_v1  ;;  %v2248_v32 = vadd.f32 %v2247_v26, %v2246_v31  ;;  %1724 = vadd.xlane.f32.xlu0 %v1698_v10  ;;  %v1699_v33 = vmul.f32 %v3415_v43, %v1676_v24 }
 0x281   : > { %v1651_v34 = vadd.f32 %v2245_v25, %v1554_v27  ;;  %v1557_v35 = vadd.f32 %v2184_v28, %v3411_v22  ;;  %1726 = vadd.xlane.f32.xlu1 %v1699_v33 }
 0x283   : > { %v1677_v36 = vmax.f32 %v1651_v34, 0.0  ;;  %v1654_v39 = vadd.f32 %v2248_v32, %v1557_v35  ;;  %v2185_v40 = vpop.f32.mrb[60].mxu0  ;;  %v2249_v42 = vpop.f32.mrb[60].mxu1 }
 0x284   : > { %v2186_v44 = vpop.f32.mrb[61].mxu0  ;;  %v2250_v49 = vpop.f32.mrb[61].mxu1 }
 0x285   : > { %v1678_v50 = vmax.f32 %v1654_v39, 0.0  ;;  %v2187_v45 = vadd.f32 %v2186_v44, %v2185_v40  ;;  %v2251_v37 = vadd.f32 %v2250_v49, %v2249_v42  ;;  %v2188_v38 = vpop.f32.mrb[62].mxu0  ;;  %v2252_v47 = vpop.f32.mrb[62].mxu1  ;;  %v1700_v46 = vmul.f32 %v3415_v43, %v1677_v36 }
 0x286   : > { %v2189_v9 = vpop.f32.mrb[63].mxu0  ;;  %v2253_v51 = vpop.f32.mrb[63].mxu1 }
 0x287   : > { %v1562_v53 = vadd.f32 %v2187_v45, %v3411_v22  ;;  %v2190_v54 = vadd.f32 %v2189_v9, %v2188_v38  ;;  %v2254_v56 = vadd.f32 %v2253_v51, %v2252_v47  ;;  %1728 = vadd.xlane.f32.xlu0 %v1700_v46  ;;  %v1701_v57 = vmul.f32 %v3415_v43, %v1678_v50 }
 0x289   : > { %v1659_v59 = vadd.f32 %v2251_v37, %v1562_v53  ;;  %v1565_v60 = vadd.f32 %v2190_v54, %v3411_v22  ;;  %1730 = vadd.xlane.f32.xlu1 %v1701_v57 }
 0x28b   : > { %v1679_v3 = vmax.f32 %v1659_v59, 0.0  ;;  %v1662_v4 = vadd.f32 %v2254_v56, %v1565_v60 }
 0x28d   : > { %v1680_v52 = vmax.f32 %v1662_v4, 0.0  ;;  %v1702_v55 = vmul.f32 %v3415_v43, %v1679_v3 }
 0x28f   : > { %1732 = vadd.xlane.f32.xlu0 %v1702_v55  ;;  %v1703_v58 = vmul.f32 %v3415_v43, %v1680_v52 }
 0x291   : > { %1734 = vadd.xlane.f32.xlu1 %v1703_v58 }
 0x2e4   : > { %v1705_v62 = vpop.xlane.xlu0 %1704 }
 0x2e5   : > { %v1738_v63 = vadd.f32 %v3447_v61, %v1705_v62 }
 0x2e7   : > { %v2107_v5 = vmul.f32 -1.442695, %v1738_v63 }
 0x2e8   : > { %v1707_v11 = vpop.xlane.xlu0 %1706 }
 0x2e9   : > { %2422 = vpow2.f32 %v2107_v5  ;;  %v1739_v22 = vadd.f32 %v3447_v61, %v1707_v11 }
 0x2eb   : > { %v2108_v12 = vmul.f32 -1.442695, %v1739_v22 }
 0x2ec   : > { %v1709_v13 = vpop.xlane.xlu1 %1708 }
 0x2ed   : > { %2424 = vpow2.f32 %v2108_v12  ;;  %v1740_v2 = vadd.f32 %v3447_v61, %v1709_v13 }
 0x2ef   : > { %v2109_v48 = vmul.f32 -1.442695, %v1740_v2 }
 0x2f0   : > { %v1711_v6 = vpop.xlane.xlu1 %1710 }
 0x2f1   : > { %2426 = vpow2.f32 %v2109_v48  ;;  %v1741_v43 = vadd.f32 %v3447_v61, %v1711_v6 }
 0x2f3   : > { %v2423_v7 = vpop.eup %2422  ;;  %v2110_v8 = vmul.f32 -1.442695, %v1741_v43 }
 0x2f4   : > { %v1802_v14 = vadd.f32 1.0, %v2423_v7  ;;  %v1713_v17 = vpop.xlane.xlu0 %1712 }
 0x2f5   : > { %2428 = vpow2.f32 %v2110_v8  ;;  %v1742_v18 = vadd.f32 %v3447_v61, %v1713_v17 }
 0x2f6   : > { %2430 = vrcp.f32 %v1802_v14  ;;  %v1715_v19 = vpop.xlane.xlu1 %1714 }
 0x2f7   : > { %v2425_v23 = vpop.eup %2424  ;;  %v2111_v41 = vmul.f32 -1.442695, %v1742_v18  ;;  %v1743_v30 = vadd.f32 %v3447_v61, %v1715_v19 }
 0x2f8   : > { %v1803_v15 = vadd.f32 1.0, %v2425_v23 }
 0x2f9   : > { %2432 = vpow2.f32 %v2111_v41  ;;  %v2112_v16 = vmul.f32 -1.442695, %v1743_v30 }
 0x2fa   : > { %2434 = vrcp.f32 %v1803_v15 }
 0x2fb   : > { %v2427_v20 = vpop.eup %2426  ;;  %2436 = vpow2.f32 %v2112_v16 }
 0x2fc   : > { %v1804_v21 = vadd.f32 1.0, %v2427_v20  ;;  %v1717_v24 = vpop.xlane.xlu0 %1716 }
 0x2fd   : > { %v1744_v0 = vadd.f32 %v3447_v61, %v1717_v24 }
 0x2fe   : > { %2438 = vrcp.f32 %v1804_v21  ;;  %v1719_v25 = vpop.xlane.xlu1 %1718 }
 0x2ff   : > { %v2429_v1 = vpop.eup %2428  ;;  %v2113_v31 = vmul.f32 -1.442695, %v1744_v0  ;;  %v1745_v10 = vadd.f32 %v3447_v61, %v1719_v25 }
 0x300   : > { %v2431_v29 = vpop.eup %2430  ;;  %v1805_v26 = vadd.f32 1.0, %v2429_v1 }
 0x301   : > { %1851 = vst.msk [vmem:[%s3460_s12] sm:$0xff] %vm1850_vm0, %v2431_v29  ;;  %2440 = vpow2.f32 %v2113_v31  ;;  %v2114_v27 = vmul.f32 -1.442695, %v1745_v10 }
 0x302   : > { %2442 = vrcp.f32 %v1805_v26 }
 0x303   : > { %v2433_v28 = vpop.eup %2432  ;;  %2444 = vpow2.f32 %v2114_v27 }
 0x304   : > { %v2435_v32 = vpop.eup %2434  ;;  %v1806_v33 = vadd.f32 1.0, %v2433_v28  ;;  %v1721_v34 = vpop.xlane.xlu0 %1720 }
 0x305   : > { %v2437_v35 = vpop.eup %2436  ;;  %1852 = vst.msk [vmem:[%s3460_s12 + $0x8] sm:$0xff] %vm1850_vm0, %v2435_v32  ;;  %v1746_v36 = vadd.f32 %v3447_v61, %v1721_v34 }
 0x306   : > { %2446 = vrcp.f32 %v1806_v33  ;;  %v1807_v39 = vadd.f32 1.0, %v2437_v35  ;;  %v1723_v40 = vpop.xlane.xlu1 %1722 }
 0x307   : > { %v2115_v42 = vmul.f32 -1.442695, %v1746_v36  ;;  %v1747_v44 = vadd.f32 %v3447_v61, %v1723_v40 }
 0x308   : > { %v2439_v49 = vpop.eup %2438  ;;  %2448 = vrcp.f32 %v1807_v39 }
 0x309   : > { %1853 = vst.msk [vmem:[%s3460_s12 + $0x10] sm:$0xff] %vm1850_vm0, %v2439_v49  ;;  %2450 = vpow2.f32 %v2115_v42  ;;  %v2116_v50 = vmul.f32 -1.442695, %v1747_v44 }
 0x30b   : > { %v2441_v45 = vpop.eup %2440  ;;  %2452 = vpow2.f32 %v2116_v50 }
 0x30c   : > { %v2443_v37 = vpop.eup %2442  ;;  %v1808_v38 = vadd.f32 1.0, %v2441_v45  ;;  %v1725_v47 = vpop.xlane.xlu0 %1724 }
 0x30d   : > { %v2445_v46 = vpop.eup %2444  ;;  %1854 = vst.msk [vmem:[%s3460_s12 + $0x18] sm:$0xff] %vm1850_vm0, %v2443_v37  ;;  %v1748_v9 = vadd.f32 %v3447_v61, %v1725_v47 }
 0x30e   : > { %2454 = vrcp.f32 %v1808_v38  ;;  %v1809_v51 = vadd.f32 1.0, %v2445_v46  ;;  %v1727_v53 = vpop.xlane.xlu1 %1726 }
 0x30f   : > { %v2117_v54 = vmul.f32 -1.442695, %v1748_v9  ;;  %v1749_v56 = vadd.f32 %v3447_v61, %v1727_v53 }
 0x310   : > { %v2447_v57 = vpop.eup %2446  ;;  %2456 = vrcp.f32 %v1809_v51 }
 0x311   : > { %1855 = vst.msk [vmem:[%s3460_s12 + $0x20] sm:$0xff] %vm1850_vm0, %v2447_v57  ;;  %2458 = vpow2.f32 %v2117_v54  ;;  %v2118_v59 = vmul.f32 -1.442695, %v1749_v56 }
 0x312   : > { %v2449_v60 = vpop.eup %2448 }
 0x313   : > { %v2451_v3 = vpop.eup %2450  ;;  %1856 = vst.msk [vmem:[%s3460_s12 + $0x28] sm:$0xff] %vm1850_vm0, %v2449_v60  ;;  %2460 = vpow2.f32 %v2118_v59 }
 0x314   : > { %v1810_v4 = vadd.f32 1.0, %v2451_v3  ;;  %v1729_v52 = vpop.xlane.xlu0 %1728 }
 0x315   : > { %v2453_v55 = vpop.eup %2452  ;;  %v1750_v58 = vadd.f32 %v3447_v61, %v1729_v52 }
 0x316   : > { %2462 = vrcp.f32 %v1810_v4  ;;  %v1811_v62 = vadd.f32 1.0, %v2453_v55  ;;  %v1731_v63 = vpop.xlane.xlu1 %1730 }
 0x317   : > { %v2119_v5 = vmul.f32 -1.442695, %v1750_v58  ;;  %v1751_v11 = vadd.f32 %v3447_v61, %v1731_v63 }
 0x318   : > { %v2455_v22 = vpop.eup %2454  ;;  %2464 = vrcp.f32 %v1811_v62 }
 0x319   : > { %1857 = vst.msk [vmem:[%s3460_s12 + $0x30] sm:$0xff] %vm1850_vm0, %v2455_v22  ;;  %2466 = vpow2.f32 %v2119_v5  ;;  %v2120_v12 = vmul.f32 -1.442695, %v1751_v11 }
 0x31a   : > { %v2457_v13 = vpop.eup %2456 }
 0x31b   : > { %v2459_v2 = vpop.eup %2458  ;;  %1858 = vst.msk [vmem:[%s3460_s12 + $0x38] sm:$0xff] %vm1850_vm0, %v2457_v13  ;;  %2468 = vpow2.f32 %v2120_v12 }
 0x31c   : > { %v1812_v48 = vadd.f32 1.0, %v2459_v2  ;;  %v1733_v6 = vpop.xlane.xlu0 %1732 }
 0x31d   : > { %v2461_v43 = vpop.eup %2460  ;;  %v1752_v7 = vadd.f32 %v3447_v61, %v1733_v6 }
 0x31e   : > { %2470 = vrcp.f32 %v1812_v48  ;;  %v1813_v8 = vadd.f32 1.0, %v2461_v43  ;;  %v1735_v14 = vpop.xlane.xlu1 %1734 }
 0x31f   : > { %v2121_v17 = vmul.f32 -1.442695, %v1752_v7  ;;  %v1753_v18 = vadd.f32 %v3447_v61, %v1735_v14 }
 0x320   : > { %v2463_v19 = vpop.eup %2462  ;;  %2472 = vrcp.f32 %v1813_v8 }
 0x321   : > { %1859 = vst.msk [vmem:[%s3460_s12 + $0x40] sm:$0xff] %vm1850_vm0, %v2463_v19  ;;  %2474 = vpow2.f32 %v2121_v17  ;;  %v2122_v23 = vmul.f32 -1.442695, %v1753_v18 }
 0x322   : > { %v2465_v41 = vpop.eup %2464 }
 0x323   : > { %v2467_v30 = vpop.eup %2466  ;;  %1860 = vst.msk [vmem:[%s3460_s12 + $0x48] sm:$0xff] %vm1850_vm0, %v2465_v41  ;;  %2476 = vpow2.f32 %v2122_v23 }
 0x324   : > { %v1814_v15 = vadd.f32 1.0, %v2467_v30 }
 0x325   : > { %v2469_v16 = vpop.eup %2468 }
 0x326   : > { %2478 = vrcp.f32 %v1814_v15  ;;  %v1815_v20 = vadd.f32 1.0, %v2469_v16 }
 0x328   : > { %v2471_v61 = vpop.eup %2470  ;;  %2480 = vrcp.f32 %v1815_v20 }
 0x329   : > { %1861 = vst.msk [vmem:[%s3460_s12 + $0x50] sm:$0xff] %vm1850_vm0, %v2471_v61 }
 0x32a   : > { %v2473_v21 = vpop.eup %2472 }
 0x32b   : > { %v2475_v24 = vpop.eup %2474  ;;  %1862 = vst.msk [vmem:[%s3460_s12 + $0x58] sm:$0xff] %vm1850_vm0, %v2473_v21 }
 0x32c   : > { %v1816_v0 = vadd.f32 1.0, %v2475_v24 }
 0x32d   : > { %v2477_v25 = vpop.eup %2476 }
 0x32e   : > { %2482 = vrcp.f32 %v1816_v0  ;;  %v1817_v1 = vadd.f32 1.0, %v2477_v25 }
 0x330   : > { %v2479_v31 = vpop.eup %2478  ;;  %2484 = vrcp.f32 %v1817_v1 }
 0x331   : > { %1863 = vst.msk [vmem:[%s3460_s12 + $0x60] sm:$0xff] %vm1850_vm0, %v2479_v31 }
 0x332   : > { %v2481_v10 = vpop.eup %2480 }
 0x333   : > { %1864 = vst.msk [vmem:[%s3460_s12 + $0x68] sm:$0xff] %vm1850_vm0, %v2481_v10 }
 0x338   : > { %v2483_v29 = vpop.eup %2482 }
 0x339   : > { %1865 = vst.msk [vmem:[%s3460_s12 + $0x70] sm:$0xff] %vm1850_vm0, %v2483_v29 }
 0x33a   : > { %v2485_v26 = vpop.eup %2484 }
 0x33b   : > { %1866 = vst.msk [vmem:[%s3460_s12 + $0x78] sm:$0xff] %vm1850_vm0, %v2485_v26 }
 0x33c PF: > { %s22_s29 = sadd.s32 1, %s2584_s29  }
 0x33d   : > { %p19_p8 = scmp.ge.s32.totalorder %s22_s29, 7  }
 0x33f   :  { %21 = sbr.rel (!%p19_p8) target bundleno = 4 (0x4), region = 103 }
 0x346   :  { %1908 = vsyncpa [#allocation4], 1 }
 0x347   :  { %1910 = vsyncpa [#allocation4 + $0x1], 1 }
 0x348   :  { %1911 = vsyncpa [#allocation6], 1 }

</bundles_post_ra>
